<compile_context>
chip_gen: v7x
topology: tpu7x:2x2x1
jax: 0.10.0
libtpu: 0.0.40
codegen_flags: <defaults>
</compile_context>

<pallas_src>
import jax
import jax.numpy as jnp
from jax import lax
from jax.experimental import pallas as pl
from jax.experimental.pallas import tpu as pltpu

EVAL_STEPS = 7          # NMF2D.eval_steps default
INV_T = 1.0             # NMF2D.inv_t (forced to 1 in __init__)
EPS = 1e-6              # denominator epsilon in MU updates


def _make_nmf2d_kernel(md_s, r_real, n_real, eval_steps, inv_t, eps):
    def kernel(x_ref, bases_ref, y_ref):
        # x_ref:     (1, D, Np)     bf16 input slab for this batch*segment item
        # bases_ref: (md_s, D, Rp)  f32 initial bases (whole param, fetched once)
        # y_ref:     (1, D, Np)     bf16 reconstruction  bases @ coef^T
        x_bf = x_ref[0]                                     # (D, Np) bf16

        if md_s > 1:
            seg = pl.program_id(0) % md_s
        else:
            seg = 0
        bases = bases_ref[seg]                              # (D, Rp) f32
        b_bf = bases.astype(jnp.bfloat16)

        # logits = x^T @ bases; reused as num_c of the first MU step
        # (bases has not changed yet at that point).
        logits = jnp.einsum("dn,dr->nr", x_bf, b_bf,
                            preferred_element_type=jnp.float32)        # (Np, Rp)
        n_pad, r_pad = logits.shape

        # Initial coef: hand-rolled softmax over the real R columns; padded
        # columns get -inf so they stay exactly 0 through all MU updates.
        z = logits if inv_t == 1.0 else inv_t * logits
        if r_real < r_pad:
            col = lax.broadcasted_iota(jnp.int32, (n_pad, r_pad), 1)
            z = jnp.where(col < r_real, z, -jnp.inf)
        m = jnp.max(z, axis=-1, keepdims=True)              # finite (real cols exist)
        e = jnp.exp(z - m)                                  # padded cols -> exp(-inf)=0
        s = jnp.sum(e, axis=-1, keepdims=True)              # >= 1
        coef = e * pl.reciprocal(s, approx=True)            # (Np, Rp) f32
        if n_real < n_pad:
            # Padded spatial rows must carry exactly-zero coef so they do not
            # pollute ctc / the bases update.
            row = lax.broadcasted_iota(jnp.int32, (n_pad, r_pad), 0)
            coef = jnp.where(row < n_real, coef, 0.0)

        # num_c carried in bf16 (it is the output of a bf16 matmul anyway).
        num_c = logits.astype(jnp.bfloat16)

        def mu_step(_, carry):
            bases, coef, num_c = carry
            b_bf = bases.astype(jnp.bfloat16)
            c_bf = coef.astype(jnp.bfloat16)
            # --- coef update ---
            btb = jnp.einsum("dr,ds->rs", b_bf, b_bf,
                             preferred_element_type=jnp.float32)       # (Rp, Rp)
            den_c = jnp.dot(c_bf, btb.astype(jnp.bfloat16),
                            preferred_element_type=jnp.float32)        # (Np, Rp)
            coef = (coef * num_c.astype(jnp.float32)
                    * pl.reciprocal(den_c + eps, approx=True))
            # --- bases update ---
            c_bf = coef.astype(jnp.bfloat16)
            num_b = jnp.einsum("dn,nr->dr", x_bf, c_bf,
                               preferred_element_type=jnp.float32)     # (D, Rp)
            ctc = jnp.einsum("nr,ns->rs", c_bf, c_bf,
                             preferred_element_type=jnp.float32)       # (Rp, Rp)
            den_b = jnp.dot(b_bf, ctc.astype(jnp.bfloat16),
                            preferred_element_type=jnp.float32)        # (D, Rp)
            bases = bases * num_b * pl.reciprocal(den_b + eps, approx=True)
            # num_c for the next MU step / the final compute_coef.
            num_c = jnp.einsum("dn,dr->nr", x_bf, bases.astype(jnp.bfloat16),
                               preferred_element_type=jnp.float32
                               ).astype(jnp.bfloat16)                  # (Np, Rp)
            return bases, coef, num_c

        bases, coef, num_c = lax.fori_loop(0, eval_steps, mu_step,
                                           (bases, coef, num_c))

        # compute_coef: one final coef refinement (no bases update).
        b_bf = bases.astype(jnp.bfloat16)
        btb = jnp.einsum("dr,ds->rs", b_bf, b_bf,
                         preferred_element_type=jnp.float32)
        den_c = jnp.dot(coef.astype(jnp.bfloat16), btb.astype(jnp.bfloat16),
                        preferred_element_type=jnp.float32)
        coef = (coef * num_c.astype(jnp.float32)
                * pl.reciprocal(den_c + eps, approx=True))

        # Reconstruction: bases @ coef^T (padded columns/rows contribute 0).
        y = jnp.einsum("dr,nr->dn", b_bf, coef.astype(jnp.bfloat16),
                       preferred_element_type=jnp.float32)
        y_ref[0] = y.astype(y_ref.dtype)

    return kernel


def nmf2d_forward(x, bases_param, md_s=1, eval_steps=EVAL_STEPS):
    """Eval-mode NMF2D forward.

    x:           (B, C, H, W)
    bases_param: (md_s, C // md_s, R)  -- already L2-normalized over dim 1
    returns:     (B, C, H, W), same dtype as x
    """
    B, C, H, W = x.shape
    D = C // md_s
    N = H * W
    R = bases_param.shape[-1]
    BS = B * md_s

    # Lane-dense dims: pad R and N up to multiples of 128 (zero padding).
    Rp = ((R + 127) // 128) * 128
    Np = ((N + 127) // 128) * 128

    bases_p = jnp.pad(bases_param.astype(jnp.float32),
                      ((0, 0), (0, 0), (0, Rp - R)))

    # Matmul operands are bf16 in-kernel; feed x as bf16 (halves HBM/VMEM use).
    x_flat = x.reshape(BS, D, N).astype(jnp.bfloat16)
    if Np != N:
        x_flat = jnp.pad(x_flat, ((0, 0), (0, 0), (0, Np - N)))

    # VMEM budget: ~75% of physical; fall back to the compiler default rather
    # than silently capping at a small value.
    try:
        vmem_limit = int(min(
            pltpu.get_tpu_info().vmem_capacity_bytes * 3 // 4,
            100 * 1024 * 1024))
    except Exception:
        vmem_limit = None

    # Advisory cost estimate (dominant per-item matmul FLOPs).
    n_dnr = 2 * eval_steps + 2      # x^T@bases (steps+1) + x@coef (steps) + recon
    n_nrr = 2 * eval_steps + 1      # den_c + ctc
    n_drr = 2 * eval_steps + 1      # btb + den_b
    flops = BS * 2 * (n_dnr * D * Np * Rp + n_nrr * Np * Rp * Rp
                      + n_drr * D * Rp * Rp)
    cost = pl.CostEstimate(
        flops=int(flops),
        transcendentals=int(BS * Np * Rp * (2 * eval_steps + 3)),
        bytes_accessed=int(x_flat.size * 2 + BS * D * Np * 2 + bases_p.size * 4),
    )

    kernel = _make_nmf2d_kernel(md_s, R, N, eval_steps, INV_T, EPS)

    y = pl.pallas_call(
        kernel,
        out_shape=jax.ShapeDtypeStruct((BS, D, Np), jnp.bfloat16),
        grid_spec=pltpu.PrefetchScalarGridSpec(
            num_scalar_prefetch=0,
            grid=(BS,),
            in_specs=[
                pl.BlockSpec((1, D, Np), lambda b: (b, 0, 0)),
                # whole bases param, fetched once (constant index_map);
                # segment selected in-kernel via program_id % md_s.
                pl.BlockSpec((md_s, D, Rp), lambda b: (0, 0, 0)),
            ],
            out_specs=pl.BlockSpec((1, D, Np), lambda b: (b, 0, 0)),
        ),
        compiler_params=pltpu.CompilerParams(
            dimension_semantics=("parallel",),
            vmem_limit_bytes=vmem_limit,
        ),
        cost_estimate=cost,
    )(x_flat, bases_p)
    # TODO(synk): for very large N (>= ~8k on v7x / ~16k on v5e/v6e), stream
    # x/y in N-chunks (memory_space=pl.ANY + pltpu.emit_pipeline, accumulating
    # num_b/ctc over chunks) and drop to pipeline_mode=pl.Buffered(1) on the
    # big blocks; whole-slab blocking is fine at typical decode-head sizes.

    if Np != N:
        y = y[:, :, :N]
    return y.reshape(B, C, H, W).astype(x.dtype)


def _nmf2d_reference(x, bases_param, md_s=1, eval_steps=EVAL_STEPS, eps=EPS):
    """Pure-JAX f32 reference mirroring the torch module (eval path)."""
    B, C, H, W = x.shape
    D = C // md_s
    N = H * W
    xf = x.reshape(B * md_s, D, N).astype(jnp.float32)
    bases = jnp.tile(bases_param.astype(jnp.float32), (B, 1, 1))
    coef = jax.nn.softmax(INV_T * jnp.einsum("bdn,bdr->bnr", xf, bases), axis=-1)
    for _ in range(eval_steps):
        num = jnp.einsum("bdn,bdr->bnr", xf, bases)
        den = jnp.einsum("bnr,brs->bns", coef,
                         jnp.einsum("bdr,bds->brs", bases, bases))
        coef = coef * num / (den + eps)
        num = jnp.einsum("bdn,bnr->bdr", xf, coef)
        den = jnp.einsum("bdr,brs->bds", bases,
                         jnp.einsum("bnr,bns->brs", coef, coef))
        bases = bases * num / (den + eps)
    num = jnp.einsum("bdn,bdr->bnr", xf, bases)
    den = jnp.einsum("bnr,brs->bns", coef,
                     jnp.einsum("bdr,bds->brs", bases, bases))
    coef = coef * num / (den + eps)
    y = jnp.einsum("bdr,bnr->bdn", bases, coef)
    return y.reshape(B, C, H, W)


def _init_bases(key, md_s, ham_channels, md_r):
    """Deterministic analogue of f.normalize(torch.rand((s, C//s, r)))."""
    bases = jax.random.uniform(key, (md_s, ham_channels // md_s, md_r),
                               dtype=jnp.float32)
    norm = jnp.sqrt(jnp.sum(bases * bases, axis=1, keepdims=True))
    return bases / jnp.maximum(norm, 1e-12)


if __name__ == "__main__":
    key = jax.random.PRNGKey(0)

    # (B, C, H, W, md_s, md_r): exercise lane-aligned N, padded N, and md_s>1.
    cases = [
        (2, 16, 16, 16, 1, 64),   # N=256 (lane-dense), md_s=1
        (1, 16, 12, 12, 1, 64),   # N=144 -> padded to 256
        (2, 16, 8, 8, 2, 16),     # md_s=2 segment indexing, N=64 -> 128
    ]

    for idx, (B, C, H, W, MD_S, MD_R) in enumerate(cases):
        key, kx, kb = jax.random.split(key, 3)
        # Non-negative input (typical post-ReLU feature map fed to the head).
        x = jax.random.uniform(kx, (B, C, H, W), dtype=jnp.float32)
        bases_param = _init_bases(kb, MD_S, C, MD_R)

        y = nmf2d_forward(x, bases_param, md_s=MD_S)
        jax.block_until_ready(y)

        assert y.shape == (B, C, H, W), (idx, y.shape)
        assert bool(jnp.all(jnp.isfinite(y))), idx

        # bf16 MXU operands + bf16 output + approx reciprocal -> lenient check
        # against the f32 reference.
        y_ref = _nmf2d_reference(x, bases_param, md_s=MD_S)
        rel = float(jnp.linalg.norm(y - y_ref) /
                    (jnp.linalg.norm(y_ref) + 1e-12))
        assert rel < 0.1, f"case {idx}: relative error too large: {rel}"

    print("KERNEL_OK")
</pallas_src>

<mosaic_0001>
module attributes {stable_mosaic.version = 11 : i64} {
  func.func @kernel(%arg0: i32, %arg1: memref<1x16x256xbf16, #tpu.memory_space<vmem>>, %arg2: memref<1x16x128xf32, #tpu.memory_space<vmem>>, %arg3: memref<1x16x256xbf16, #tpu.memory_space<vmem>>) attributes {dimension_semantics = [#tpu.dimension_semantics<parallel>], iteration_bounds = array<i64: 2>, scalar_prefetch = 0 : i64, scratch_operands = 0 : i64, tpu.core_type = #tpu.core_type<tc>, window_params = [{transform_indices = @transform_0, window_bounds = array<i64: 1, 16, 256>}, {pipeline_mode = #tpu.pipeline_mode<synchronous>, transform_indices = @transform_1, window_bounds = array<i64: 1, 16, 128>}, {transform_indices = @transform_2, window_bounds = array<i64: 1, 16, 256>}]} {
    %c0 = arith.constant 0 : index
    %c0_0 = arith.constant 0 : index
    %c0_1 = arith.constant 0 : index
    %0 = vector.load %arg1[%c0, %c0_0, %c0_1] : memref<1x16x256xbf16, #tpu.memory_space<vmem>>, vector<1x16x256xbf16>
    %1 = vector.shape_cast %0 : vector<1x16x256xbf16> to vector<16x256xbf16>
    %c0_2 = arith.constant 0 : index
    %c0_3 = arith.constant 0 : index
    %c0_4 = arith.constant 0 : index
    %2 = vector.load %arg2[%c0_2, %c0_3, %c0_4] : memref<1x16x128xf32, #tpu.memory_space<vmem>>, vector<1x16x128xf32>
    %3 = vector.shape_cast %2 : vector<1x16x128xf32> to vector<16x128xf32>
    %4 = arith.truncf %3 : vector<16x128xf32> to vector<16x128xbf16>
    "tpu.trace_start"() <{level = 10 : i32, message = "dn,dr->nr"}> : () -> ()
    %cst = arith.constant dense<0.000000e+00> : vector<256x128xf32>
    %5 = tpu.matmul %1, %4, %cst {dimension_numbers = #tpu.dot_dimension_numbers<[0], [0], [1], [1], [0, 1, 1, 1], [], []>} : vector<16x256xbf16>, vector<16x128xbf16>, vector<256x128xf32> -> vector<256x128xf32>
    "tpu.trace_stop"() : () -> ()
    %6 = tpu.iota {dimensions = array<i32: 1>} : vector<256x128xi32>
    %c64_i32 = arith.constant 64 : i32
    %7 = vector.broadcast %c64_i32 : i32 to vector<256x128xi32>
    %8 = arith.cmpi slt, %6, %7 : vector<256x128xi32>
    %cst_5 = arith.constant 0xFF800000 : f32
    %9 = vector.broadcast %cst_5 : f32 to vector<256x128xf32>
    %10 = arith.select %8, %5, %9 : vector<256x128xi1>, vector<256x128xf32>
    %cst_6 = arith.constant dense<0xFF800000> : vector<256xf32>
    %11 = vector.multi_reduction <maximumf>, %10, %cst_6 [1] : vector<256x128xf32> to vector<256xf32>
    %12 = vector.shape_cast %11 : vector<256xf32> to vector<256x1xf32>
    %13 = vector.broadcast %12 : vector<256x1xf32> to vector<256x128xf32>
    %14 = arith.subf %10, %13 : vector<256x128xf32>
    %15 = math.exp %14 : vector<256x128xf32>
    %cst_7 = arith.constant dense<0.000000e+00> : vector<256xf32>
    %16 = vector.multi_reduction <add>, %15, %cst_7 [1] : vector<256x128xf32> to vector<256xf32>
    %17 = vector.shape_cast %16 : vector<256xf32> to vector<256x1xf32>
    %18 = tpu.reciprocal %17 {approx = true} : vector<256x1xf32> -> vector<256x1xf32>
    %19 = vector.broadcast %18 : vector<256x1xf32> to vector<256x128xf32>
    %20 = arith.mulf %15, %19 : vector<256x128xf32>
    %21 = arith.truncf %5 : vector<256x128xf32> to vector<256x128xbf16>
    %c0_i32 = arith.constant 0 : i32
    %c7_i32 = arith.constant 7 : i32
    %22 = arith.addi %c0_i32, %c7_i32 : i32
    %c1_i32 = arith.constant 1 : i32
    %23:3 = scf.for %arg4 = %c0_i32 to %22 step %c1_i32 iter_args(%arg5 = %3, %arg6 = %20, %arg7 = %21) -> (vector<16x128xf32>, vector<256x128xf32>, vector<256x128xbf16>)  : i32 {
      %41 = arith.truncf %arg5 : vector<16x128xf32> to vector<16x128xbf16>
      %42 = arith.truncf %arg6 : vector<256x128xf32> to vector<256x128xbf16>
      "tpu.trace_start"() <{level = 10 : i32, message = "dr,ds->rs"}> : () -> ()
      %cst_15 = arith.constant dense<0.000000e+00> : vector<128x128xf32>
      %43 = tpu.matmul %41, %41, %cst_15 {dimension_numbers = #tpu.dot_dimension_numbers<[0], [0], [1], [1], [0, 1, 1, 1], [], []>} : vector<16x128xbf16>, vector<16x128xbf16>, vector<128x128xf32> -> vector<128x128xf32>
      "tpu.trace_stop"() : () -> ()
      %44 = arith.truncf %43 : vector<128x128xf32> to vector<128x128xbf16>
      %cst_16 = arith.constant dense<0.000000e+00> : vector<256x128xf32>
      %45 = tpu.matmul %42, %44, %cst_16 {dimension_numbers = #tpu.dot_dimension_numbers<[1], [0], [0], [1], [0, 0, 1, 1], [], []>} : vector<256x128xbf16>, vector<128x128xbf16>, vector<256x128xf32> -> vector<256x128xf32>
      %46 = arith.extf %arg7 : vector<256x128xbf16> to vector<256x128xf32>
      %47 = arith.mulf %arg6, %46 : vector<256x128xf32>
      %cst_17 = arith.constant 9.99999997E-7 : f32
      %48 = vector.broadcast %cst_17 : f32 to vector<256x128xf32>
      %49 = arith.addf %45, %48 : vector<256x128xf32>
      %50 = tpu.reciprocal %49 {approx = true} : vector<256x128xf32> -> vector<256x128xf32>
      %51 = arith.mulf %47, %50 : vector<256x128xf32>
      %52 = arith.truncf %51 : vector<256x128xf32> to vector<256x128xbf16>
      "tpu.trace_start"() <{level = 10 : i32, message = "dn,nr->dr"}> : () -> ()
      %cst_18 = arith.constant dense<0.000000e+00> : vector<16x128xf32>
      %53 = tpu.matmul %1, %52, %cst_18 {dimension_numbers = #tpu.dot_dimension_numbers<[1], [0], [0], [1], [0, 0, 1, 1], [], []>} : vector<16x256xbf16>, vector<256x128xbf16>, vector<16x128xf32> -> vector<16x128xf32>
      "tpu.trace_stop"() : () -> ()
      "tpu.trace_start"() <{level = 10 : i32, message = "nr,ns->rs"}> : () -> ()
      %cst_19 = arith.constant dense<0.000000e+00> : vector<128x128xf32>
      %54 = tpu.matmul %52, %52, %cst_19 {dimension_numbers = #tpu.dot_dimension_numbers<[0], [0], [1], [1], [0, 1, 1, 1], [], []>} : vector<256x128xbf16>, vector<256x128xbf16>, vector<128x128xf32> -> vector<128x128xf32>
      "tpu.trace_stop"() : () -> ()
      %55 = arith.truncf %54 : vector<128x128xf32> to vector<128x128xbf16>
      %cst_20 = arith.constant dense<0.000000e+00> : vector<16x128xf32>
      %56 = tpu.matmul %41, %55, %cst_20 {dimension_numbers = #tpu.dot_dimension_numbers<[1], [0], [0], [1], [0, 0, 1, 1], [], []>} : vector<16x128xbf16>, vector<128x128xbf16>, vector<16x128xf32> -> vector<16x128xf32>
      %57 = arith.mulf %arg5, %53 : vector<16x128xf32>
      %cst_21 = arith.constant 9.99999997E-7 : f32
      %58 = vector.broadcast %cst_21 : f32 to vector<16x128xf32>
      %59 = arith.addf %56, %58 : vector<16x128xf32>
      %60 = tpu.reciprocal %59 {approx = true} : vector<16x128xf32> -> vector<16x128xf32>
      %61 = arith.mulf %57, %60 : vector<16x128xf32>
      %62 = arith.truncf %61 : vector<16x128xf32> to vector<16x128xbf16>
      "tpu.trace_start"() <{level = 10 : i32, message = "dn,dr->nr"}> : () -> ()
      %cst_22 = arith.constant dense<0.000000e+00> : vector<256x128xf32>
      %63 = tpu.matmul %1, %62, %cst_22 {dimension_numbers = #tpu.dot_dimension_numbers<[0], [0], [1], [1], [0, 1, 1, 1], [], []>} : vector<16x256xbf16>, vector<16x128xbf16>, vector<256x128xf32> -> vector<256x128xf32>
      "tpu.trace_stop"() : () -> ()
      %64 = arith.truncf %63 : vector<256x128xf32> to vector<256x128xbf16>
      scf.yield %61, %51, %64 : vector<16x128xf32>, vector<256x128xf32>, vector<256x128xbf16>
    }
    %24 = arith.truncf %23#0 : vector<16x128xf32> to vector<16x128xbf16>
    "tpu.trace_start"() <{level = 10 : i32, message = "dr,ds->rs"}> : () -> ()
    %cst_8 = arith.constant dense<0.000000e+00> : vector<128x128xf32>
    %25 = tpu.matmul %24, %24, %cst_8 {dimension_numbers = #tpu.dot_dimension_numbers<[0], [0], [1], [1], [0, 1, 1, 1], [], []>} : vector<16x128xbf16>, vector<16x128xbf16>, vector<128x128xf32> -> vector<128x128xf32>
    "tpu.trace_stop"() : () -> ()
    %26 = arith.truncf %23#1 : vector<256x128xf32> to vector<256x128xbf16>
    %27 = arith.truncf %25 : vector<128x128xf32> to vector<128x128xbf16>
    %cst_9 = arith.constant dense<0.000000e+00> : vector<256x128xf32>
    %28 = tpu.matmul %26, %27, %cst_9 {dimension_numbers = #tpu.dot_dimension_numbers<[1], [0], [0], [1], [0, 0, 1, 1], [], []>} : vector<256x128xbf16>, vector<128x128xbf16>, vector<256x128xf32> -> vector<256x128xf32>
    %29 = arith.extf %23#2 : vector<256x128xbf16> to vector<256x128xf32>
    %30 = arith.mulf %23#1, %29 : vector<256x128xf32>
    %cst_10 = arith.constant 9.99999997E-7 : f32
    %31 = vector.broadcast %cst_10 : f32 to vector<256x128xf32>
    %32 = arith.addf %28, %31 : vector<256x128xf32>
    %33 = tpu.reciprocal %32 {approx = true} : vector<256x128xf32> -> vector<256x128xf32>
    %34 = arith.mulf %30, %33 : vector<256x128xf32>
    %35 = arith.truncf %34 : vector<256x128xf32> to vector<256x128xbf16>
    "tpu.trace_start"() <{level = 10 : i32, message = "dr,nr->dn"}> : () -> ()
    %cst_11 = arith.constant dense<0.000000e+00> : vector<16x256xf32>
    %36 = tpu.matmul %24, %35, %cst_11 {dimension_numbers = #tpu.dot_dimension_numbers<[1], [1], [0], [0], [0, 0, 1, 0], [], []>} : vector<16x128xbf16>, vector<256x128xbf16>, vector<16x256xf32> -> vector<16x256xf32>
    "tpu.trace_stop"() : () -> ()
    %37 = arith.truncf %36 : vector<16x256xf32> to vector<16x256xbf16>
    %c0_12 = arith.constant 0 : index
    %c0_13 = arith.constant 0 : index
    %c0_14 = arith.constant 0 : index
    %38 = vector.load %arg3[%c0_12, %c0_13, %c0_14] : memref<1x16x256xbf16, #tpu.memory_space<vmem>>, vector<1x16x256xbf16>
    %39 = vector.shape_cast %38 : vector<1x16x256xbf16> to vector<16x256xbf16>
    %40 = vector.shape_cast %37 : vector<16x256xbf16> to vector<1x16x256xbf16>
    tpu.vector_store %arg3[%c0_12, %c0_13, %c0_14], %40 {strides = array<i32>} : memref<1x16x256xbf16, #tpu.memory_space<vmem>>, vector<1x16x256xbf16>,
    return
  }
  func.func @transform_0(%arg0: i32) -> (i32, i32, i32) {
    %c0_i32 = arith.constant 0 : i32
    %c0_i32_0 = arith.constant 0 : i32
    %c0_i32_1 = arith.constant 0 : i32
    return %arg0, %c0_i32, %c0_i32_0 : i32, i32, i32
  }
  func.func @transform_1(%arg0: i32) -> (i32, i32, i32) {
    %c0_i32 = arith.constant 0 : i32
    %c0_i32_0 = arith.constant 0 : i32
    %c0_i32_1 = arith.constant 0 : i32
    %c0_i32_2 = arith.constant 0 : i32
    return %c0_i32, %c0_i32_0, %c0_i32_1 : i32, i32, i32
  }
  func.func @transform_2(%arg0: i32) -> (i32, i32, i32) {
    %c0_i32 = arith.constant 0 : i32
    %c0_i32_0 = arith.constant 0 : i32
    %c0_i32_1 = arith.constant 0 : i32
    return %arg0, %c0_i32, %c0_i32_0 : i32, i32, i32
  }
}

</mosaic_0001>

<bundles_post_ra>
// kernel: tpu_custom_call.1
= control target key start
LH: loop header
LB: loop body
LE: loop exit
PB: predicated region body
PF: predicated region fallthrough
CT: control target
= control target key end

     0   :  { %7 = vsyncpa [#allocation3], 0  ;;  %s6105_s0 = inlined_call_operand.hbm [shape: bf16[2,16,256], index: 0, kind: input, shape index: {}]   ;;  %s6106_s1 = inlined_call_operand.hbm [shape: f32[1,16,128], index: 1, kind: input, shape index: {}]   ;;  %s6107_s2 = inlined_call_operand.hbm [shape: bf16[2,16,256], index: 2, kind: output, shape index: {}]  }
   0x1   :  { %9 = vsyncpa [#allocation3 + $0x1], 0 }
   0x2   :  { %10 = vsyncpa [#allocation6], 0 }
   0x3   :  { %11 = vsyncpa [#allocation4], 0 }
   0x4   :  { %13 = vsyncpa [#allocation4 + $0x1], 0  ;;  %s4283_s9 = smov 0   ;;  %s4285_s10 = smov 0  }
   0x5   :  { %s4287_s11 = smov 0   ;;  %s4289_s12 = smov 0  }
   0x6 LB: > { %s4304_s13 = sadd.s32 4294967295, %s4053_s12   ;;  %s2476_s14 = sadd.s32 4294967294, %s4053_s12   ;;  %s4053_s12 = sphi %s4289_s12, %s6548_s12   ;;  %s4049_s11 = sphi %s4287_s11, %s6547_s11   ;;  %s4045_s10 = sphi %s4285_s10, %s6546_s10   ;;  %s4041_s9 = sphi %s4283_s9, %s6545_s9  }
   0x7   : > { %p39_p0 = scmp.ne.s32.totalorder %s4045_s10, %s4041_s9  ;;  %p6108_p1 = scmp.eq.s32.totalorder %s4304_s13, 0 }
   0x8   : > { %p90_p3 = scmp.eq.s32.totalorder %s2476_s14, 1  ;;  %p2477_p5 = scmp.ge.s32.totalorder %s4053_s12, 1 }
   0x9   : > { %p4313_p4 = por %p6108_p1, %p39_p0  ;;  %p97_p7 = scmp.lt.s32.totalorder %s4053_s12, 3 }
   0xa   : > { %p4318_p6 = por %p90_p3, %p39_p0  ;;  %s4259_s18 = smov [#allocation5]  }
   0xb   : > { %s6209_s15 = scalar_select %p4313_p4, 1, 0 }
   0xc   : > { %s6210_s16 = scalar_select %p4318_p6, 1, 0 }
   0xd   : > { %p4323_p8 = pnand %p2477_p5, %p97_p7  ;;  %s109_s19 = sshll.u32 %s4259_s18, 4  ;;  %s4327_s19 = int_to_ptr.vmem [resolvable:$true] %s109_s19 }
   0xe   : > { %s4339_s21 = sadd.s32 1, %s4053_s12   ;;  %s26_s22 = sadd.s32 1, %s4049_s11 }
   0xf   : > { %s6211_s17 = scalar_select %p4323_p8, 1, 0 }
  0x10   : > { %p2993_p9 = pneg %p4323_p8  ;;  %s23_s23 = ssub.s32 %s4053_s12, %s4339_s21 }
  0x11   : > { %s3721_s26 = scalar_lea.hbm %s6106_s1, 256 }
  0x12   : > { %p4334_p11 = pnand %p2993_p9, %p6108_p1  ;;  %p3722_p12 = scmp.ne.s32.totalorder %s6106_s1, %s3721_s26 }
  0x13   : > { %p3728_p5 = scmp.lt.u32.totalorder %s3721_s26, %s6106_s1 }
  0x14   : > { %p3723_p13 = pneg %p4334_p11 }
  0x16   : > { %p3724_p0 = pnand %p3723_p13, %p3722_p12 }
  0x18   : > { %p3725_p3 = pneg %p3724_p0 }
  0x1a   : > { %p3730_p7 = pnand %p3728_p5, %p3725_p3 }
  0x1c   : > { %3733 = shalt.err (!%p3730_p7)
}
  0x1d   : > { %s3734_s3 = scalar_lea.vmem %s4327_s19, 256  ;;  %p3742_p2 = scmp.lt.s32.totalorder %s4327_s19, %s4327_s19 }
  0x1e   : > { %p3735_p9 = scmp.ne.s32.totalorder %s4327_s19, %s3734_s3  ;;  %p3743_p6 = scmp.lt.s32.totalorder %s3734_s3, %s3734_s3 }
  0x20   : > { %p3737_p10 = pnand %p3735_p9, %p3723_p13  ;;  %p3744_p4 = por %p3743_p6, %p3742_p2 }
  0x22   : > { %p3738_p1 = pneg %p3737_p10 }
  0x24   : > { %p3745_p8 = pnand %p3744_p4, %p3738_p1 }
  0x26   : > { %3748 = shalt.err (!%p3745_p8)
}
  0x27   : > { %s4260_s4 = smov 128   ;;  %s4261_s5 = smov 8  }
  0x28   : > { %2996 = dma.hbm_to_vmem [thread:$0]  (!%p4334_p11), %s6106_s1, 256, %s4327_s19, [#allocation6], %s4260_s4, %s4260_s4, %s4261_s5  }
  0x29   : > { %p24_p1 = scmp.eq.s32.totalorder %s23_s23, 0  ;;  %p33_p2 = scmp.ne.s32.totalorder %s4049_s11, %s4045_s10 }
  0x2a   : > { %p34_p4 = scmp.eq.s32.totalorder %s4053_s12, 0  ;;  %p3006_p6 = scmp.lt.s32.totalorder %s4053_s12, 2 }
  0x2b   : > { %s4373_s8 = scalar_select %p24_p1, %s4049_s11, %s26_s22  }
  0x2c   : > { %p35_p8 = por %p34_p4, %p33_p2  ;;  %p6213_p10 = scmp.eq.s32.totalorder %s4304_s13, 1 }
  0x2d   : > { %s123_s18 = sand.u32 1, %s4049_s11   ;;  %s2544_s20 = sshll.u32 %s4053_s12, 8 }
  0x2e   : > { %p4377_p12 = por %p6213_p10, %p33_p2  ;;  %s2480_s24 = sshll.u32 %s123_s18, 4 }
  0x2f   : > { %s4386_s27 = scalar_lea.hbm %s6105_s0, %s2544_s20  ;;  %s127_s19 = scalar_lea.vmem [#allocation2], %s2480_s24 }
  0x30   : > { %s134_s22 = sshll.u32 %s127_s19, 4  ;;  %p4388_p11 = pnand %p3006_p6, %p35_p8  ;;  %s4392_s22 = int_to_ptr.vmem [resolvable:$true] %s134_s22 }
  0x31   : > { %s4394_s28 = scalar_lea.sflag [#allocation3], %s123_s18  ;;  %s3749_s29 = scalar_lea.hbm %s4386_s27, 256 }
  0x32   : > { %p3750_p13 = scmp.ne.s32.totalorder %s4386_s27, %s3749_s29  ;;  %p3751_p0 = pneg %p4388_p11 }
  0x33   : > { %s3754_s6 = scalar_lea.hbm %s6105_s0, 512  ;;  %p3755_p7 = scmp.lt.u32.totalorder %s4386_s27, %s6105_s0 }
  0x34   : > { %p3752_p3 = pnand %p3751_p0, %p3750_p13  ;;  %p3756_p9 = scmp.lt.u32.totalorder %s3754_s6, %s3749_s29 }
  0x35   : > { %p3758_p2 = scmp.lt.u32.totalorder %s3749_s29, %s4386_s27 }
  0x36   : > { %p3753_p5 = pneg %p3752_p3  ;;  %p3757_p1 = por %p3756_p9, %p3755_p7 }
  0x38   : > { %p3759_p4 = por %p3758_p2, %p3757_p1 }
  0x3a   : > { %p3760_p6 = pnand %p3759_p4, %p3753_p5 }
  0x3c   : > { %3763 = shalt.err (!%p3760_p6)
}
  0x3d   : > { %s3764_s18 = scalar_lea.vmem %s4392_s22, 256  ;;  %s4262_s24 = smov [#allocation2]  }
  0x3e   : > { %p3765_p8 = scmp.ne.s32.totalorder %s4392_s22, %s3764_s18  ;;  %s3769_s25 = sshll.u32 %s4262_s24, 4  ;;  %s3770_s25 = int_to_ptr.vmem [resolvable:$false] %s3769_s25 }
  0x3f   : > { %s3771_s26 = scalar_lea.vmem %s3770_s25, 512  ;;  %p3772_p3 = scmp.lt.s32.totalorder %s4392_s22, %s3770_s25 }
  0x40   : > { %p3767_p10 = pnand %p3765_p8, %p3751_p0  ;;  %p3773_p7 = scmp.lt.s32.totalorder %s3771_s26, %s3764_s18 }
  0x42   : > { %p3768_p13 = pneg %p3767_p10  ;;  %p3774_p9 = por %p3773_p7, %p3772_p3 }
  0x44   : > { %p3775_p1 = pnand %p3774_p9, %p3768_p13 }
  0x46   : > { %3778 = shalt.err (!%p3775_p1)
}
  0x47   : > { %3000 = dma.hbm_to_vmem [thread:$0]  (!%p4388_p11), %s4386_s27, 256, %s4392_s22, %s4394_s28, %s4260_s4, %s4260_s4, %s4261_s5  }
  0x48   : > { %p6216_p0 = scmp.ne.s32.totalorder %s6211_s17, 0 }
  0x4a   : > { %146 = sbr.rel (%p6216_p0) target bundleno = 3260 (0xcbc), region = 28 }
  0x51   : > { %s4428_s19 = sand.u32 1, %s4045_s10   ;;  %p6217_p5 = scmp.ne.s32.totalorder %s6209_s15, 0 }
  0x52   : > { %s2484_s29 = sshll.u32 %s4428_s19, 4  ;;  %s149_s30 = scalar_lea.sflag [#allocation3], %s4428_s19 }
  0x53   : > { %s152_s23 = scalar_lea.vmem [#allocation2], %s2484_s29 }
  0x54   : > { %4028 = dma.done.wait (%p6217_p5), %s149_s30, 256  }
  0x55   : > { %4030 = vsyncadd (%p6217_p5), %s149_s30, 4294967040  ;;  %p6218_p11 = scmp.eq.s32.totalorder %s4304_s13, 0 }
  0x57   : > { %4032 = dma.done.wait (%p6218_p11), [#allocation6], 256   ;;  %p6219_p2 = pmov %p6218_p11 }
  0x58   : > { %v4442_v0 = vld [vmem:[%s152_s23] ss:$8 sps:$4 sm:$0xff]   ;;  %v4451_v4 = vld [vmem:[%s152_s23 + $0x4] ss:$8 sps:$4 sm:$0xff]   ;;  %vm225_vm0 = vcmask 130048   ;;  %v435_v21 = vlaneseq  ;;  %s5013_s15 = scalar_lea.vmem [#allocation7], %s2484_s29 }
  0x59   : > { %4034 = vsyncadd (%p6219_p2), [#allocation6], 4294967040  ;;  %6220 = vst [vmem:[#allocation11_spill] sm:$0xff] %v4442_v0  ;;  %v4444_v1 = vld [vmem:[#allocation5] sm:$0xff]   ;;  %v4446_v2 = vld [vmem:[#allocation5 + $0x8] sm:$0xff]   ;;  %193 = vxpose.xlu0.c.b16.start.end [1/1] (short) %v4442_v0, 128  ;;  %s5186_s17 = smov 0  }
  0x5a   : > { %6221 = vst [vmem:[#allocation12_spill] sm:$0xff] %v4444_v1  ;;  %6222 = vst [vmem:[#allocation13_spill] sm:$0xff] %v4446_v2  ;;  %v182_v3 = vpack.c.bf16 %v4446_v2, %v4444_v1  ;;  %v4518_v22 = vand.u32 127, %v435_v21 }
  0x5b   : > { %6223 = vst [vmem:[#allocation14_spill] sm:$0xff] %v4451_v4 }
  0x5c   : > { %2761 = vmatprep.subr.bf16.mxu0 %v182_v3  ;;  %2981 = vmatprep.subr.bf16.mxu1 %v182_v3  ;;  %vm437_vm1 = vcmp.lt.s32.totalorder %v4518_v22, 64 }
  0x5d   : > { %2762 = vmatpush3.bf16.msra.mxu0 %v182_v3  ;;  %2982 = vmatpush3.bf16.msra.mxu1 %v182_v3 }
  0x76   : > { %209 = vxpose.xlu0.c.b16.start.end [1/1] (short) %v4451_v4, 128 }
  0xbf   : > { %v4454_v5 = vpop.trf.xlu0 }
  0xc0   : > { %6224 = vst [vmem:[#allocation15_spill] sm:$0xff] %v4454_v5  ;;  %2763 = vmatprep.mubr.msk.bf16.mxu0 %vm225_vm0, %v4454_v5 }
  0xc3   : > { %v4458_v6 = vpop.trf.xlu0 }
  0xc4   : > { %6225 = vst [vmem:[#allocation16_spill] sm:$0xff] %v4458_v6  ;;  %2764 = vmatmul.mubr.msk.bf16.vlgmr.msra.gmra.mrb[0].mxu0 %vm225_vm0, %v4458_v6 }
  0xc7   : > { %v4462_v7 = vpop.trf.xlu0 }
  0xc8   : > { %6226 = vst [vmem:[#allocation17_spill] sm:$0xff] %v4462_v7  ;;  %2767 = vmatprep.mubr.msk.bf16.mxu0 %vm225_vm0, %v4462_v7 }
  0xcb   : > { %v4466_v8 = vpop.trf.xlu0 }
  0xcc   : > { %6227 = vst [vmem:[#allocation18_spill] sm:$0xff] %v4466_v8  ;;  %2768 = vmatmul.mubr.msk.bf16.gmra.mrb[4].mxu0 %vm225_vm0, %v4466_v8 }
  0xcf   : > { %v4470_v9 = vpop.trf.xlu0 }
  0xd0   : > { %6228 = vst [vmem:[#allocation19_spill] sm:$0xff] %v4470_v9  ;;  %2771 = vmatprep.mubr.msk.bf16.mxu0 %vm225_vm0, %v4470_v9 }
  0xd3   : > { %v4474_v10 = vpop.trf.xlu0 }
  0xd4   : > { %6229 = vst [vmem:[#allocation20_spill] sm:$0xff] %v4474_v10  ;;  %2772 = vmatmul.mubr.msk.bf16.gmra.mrb[8].mxu0 %vm225_vm0, %v4474_v10 }
  0xd7   : > { %v4478_v11 = vpop.trf.xlu0 }
  0xd8   : > { %6230 = vst [vmem:[#allocation21_spill] sm:$0xff] %v4478_v11  ;;  %2775 = vmatprep.mubr.msk.bf16.mxu0 %vm225_vm0, %v4478_v11 }
  0xdb   : > { %v4482_v12 = vpop.trf.xlu0 }
  0xdc   : > { %6231 = vst [vmem:[#allocation22_spill] sm:$0xff] %v4482_v12  ;;  %2776 = vmatmul.mubr.msk.bf16.gmra.mrb[12].mxu0 %vm225_vm0, %v4482_v12 }
  0xdf   : > { %v4486_v13 = vpop.trf.xlu0 }
  0xe0   : > { %6232 = vst [vmem:[#allocation23_spill] sm:$0xff] %v4486_v13  ;;  %2779 = vmatprep.mubr.msk.bf16.mxu1 %vm225_vm0, %v4486_v13 }
  0xe3   : > { %v4490_v14 = vpop.trf.xlu0 }
  0xe4   : > { %6233 = vst [vmem:[#allocation24_spill] sm:$0xff] %v4490_v14  ;;  %2780 = vmatmul.mubr.msk.bf16.vlgmr.msra.gmra.mrb[0].mxu1 %vm225_vm0, %v4490_v14 }
  0xe7   : > { %v4494_v15 = vpop.trf.xlu0 }
  0xe8   : > { %6234 = vst [vmem:[#allocation25_spill] sm:$0xff] %v4494_v15  ;;  %2783 = vmatprep.mubr.msk.bf16.mxu1 %vm225_vm0, %v4494_v15 }
  0xeb   : > { %v4498_v16 = vpop.trf.xlu0 }
  0xec   : > { %6235 = vst [vmem:[#allocation26_spill] sm:$0xff] %v4498_v16  ;;  %2784 = vmatmul.mubr.msk.bf16.gmra.mrb[4].mxu1 %vm225_vm0, %v4498_v16 }
  0xef   : > { %v4502_v17 = vpop.trf.xlu0 }
  0xf0   : > { %6236 = vst [vmem:[#allocation27_spill] sm:$0xff] %v4502_v17  ;;  %2787 = vmatprep.mubr.msk.bf16.mxu1 %vm225_vm0, %v4502_v17 }
  0xf3   : > { %v4506_v18 = vpop.trf.xlu0 }
  0xf4   : > { %6237 = vst [vmem:[#allocation28_spill] sm:$0xff] %v4506_v18  ;;  %2788 = vmatmul.mubr.msk.bf16.gmra.mrb[8].mxu1 %vm225_vm0, %v4506_v18 }
  0xf7   : > { %v4510_v19 = vpop.trf.xlu0 }
  0xf8   : > { %6238 = vst [vmem:[#allocation29_spill] sm:$0xff] %v4510_v19  ;;  %2791 = vmatprep.mubr.msk.bf16.mxu1 %vm225_vm0, %v4510_v19 }
  0xfb   : > { %v4514_v20 = vpop.trf.xlu0 }
  0xfc   : > { %6239 = vst [vmem:[#allocation30_spill] sm:$0xff] %v4514_v20  ;;  %2792 = vmatmul.mubr.msk.bf16.gmra.mrb[12].mxu1 %vm225_vm0, %v4514_v20 }
 0x197   : > { %v4521_v23 = vpop.f32.mrb[0].mxu0 }
 0x198   : > { %6240 = vst [vmem:[#allocation31_spill] sm:$0xff] %v4521_v23  ;;  %v4523_v24 = vpop.f32.mrb[1].mxu0  ;;  %v4528_v25 = vsel %vm437_vm1, %v4521_v23, -inf }
 0x199   : > { %6241 = vst [vmem:[#allocation32_spill] sm:$0xff] %v4523_v24  ;;  %474 = vmax.xlane.f32.xlu1 %v4528_v25  ;;  %v4531_v26 = vpop.f32.mrb[2].mxu0  ;;  %v4646_v21 = vsel %vm437_vm1, %v4523_v24, -inf }
 0x19a   : > { %6242 = vst [vmem:[#allocation33_spill] sm:$0xff] %v4531_v26  ;;  %v4535_v28 = vpop.f32.mrb[3].mxu0  ;;  %v4691_v19 = vsel %vm437_vm1, %v4531_v26, -inf }
 0x19b   : > { %6243 = vst [vmem:[#allocation34_spill] sm:$0xff] %v4535_v28  ;;  %v4737_v11 = vsel %vm437_vm1, %v4535_v28, -inf }
 0x19f   : > { %v4539_v30 = vpop.f32.mrb[4].mxu0 }
 0x1a0   : > { %6244 = vst [vmem:[#allocation35_spill] sm:$0xff] %v4539_v30  ;;  %v4541_v31 = vpop.f32.mrb[5].mxu0  ;;  %v4788_v23 = vsel %vm437_vm1, %v4539_v30, -inf }
 0x1a1   : > { %6245 = vst [vmem:[#allocation36_spill] sm:$0xff] %v4541_v31  ;;  %v4543_v32 = vpop.f32.mrb[6].mxu0  ;;  %v4548_v33 = vsel %vm437_vm1, %v4541_v31, -inf }
 0x1a2   : > { %6246 = vst [vmem:[#allocation37_spill] sm:$0xff] %v4543_v32  ;;  %v4552_v35 = vpop.f32.mrb[7].mxu0  ;;  %v4557_v36 = vsel %vm437_vm1, %v4543_v32, -inf }
 0x1a3   : > { %6247 = vst [vmem:[#allocation38_spill] sm:$0xff] %v4552_v35  ;;  %v4564_v38 = vsel %vm437_vm1, %v4552_v35, -inf }
 0x1a7   : > { %v4566_v39 = vpop.f32.mrb[8].mxu0 }
 0x1a8   : > { %6248 = vst [vmem:[#allocation39_spill] sm:$0xff] %v4566_v39  ;;  %v4568_v40 = vpop.f32.mrb[9].mxu0  ;;  %v4573_v41 = vsel %vm437_vm1, %v4566_v39, -inf }
 0x1a9   : > { %6249 = vst [vmem:[#allocation40_spill] sm:$0xff] %v4568_v40  ;;  %v4575_v42 = vpop.f32.mrb[10].mxu0  ;;  %v4580_v43 = vsel %vm437_vm1, %v4568_v40, -inf }
 0x1aa   : > { %6250 = vst [vmem:[#allocation41_spill] sm:$0xff] %v4575_v42  ;;  %v4584_v45 = vpop.f32.mrb[11].mxu0  ;;  %v4589_v46 = vsel %vm437_vm1, %v4575_v42, -inf }
 0x1ab   : > { %6251 = vst [vmem:[#allocation42_spill] sm:$0xff] %v4584_v45  ;;  %v4751_v6 = vsel %vm437_vm1, %v4584_v45, -inf }
 0x1af   : > { %v4593_v48 = vpop.f32.mrb[12].mxu0 }
 0x1b0   : > { %v4595_v49 = vpop.f32.mrb[13].mxu0  ;;  %v4600_v50 = vsel %vm437_vm1, %v4593_v48, -inf }
 0x1b1   : > { %6252 = vst [vmem:[#allocation43_spill] sm:$0xff] %v4595_v49  ;;  %v4602_v51 = vpop.f32.mrb[14].mxu0  ;;  %v4607_v52 = vsel %vm437_vm1, %v4595_v49, -inf }
 0x1b2   : > { %v4611_v54 = vpop.f32.mrb[15].mxu0  ;;  %v4616_v55 = vsel %vm437_vm1, %v4602_v51, -inf }
 0x1b3   : > { %6253 = vst [vmem:[#allocation44_spill] sm:$0xff] %v4611_v54  ;;  %v4623_v57 = vsel %vm437_vm1, %v4611_v54, -inf }
 0x1b7   : > { %v4625_v58 = vpop.f32.mrb[0].mxu1 }
 0x1b8   : > { %v4627_v59 = vpop.f32.mrb[1].mxu1  ;;  %v4632_v60 = vsel %vm437_vm1, %v4625_v58, -inf }
 0x1b9   : > { %506 = vmax.xlane.f32.xlu1 %v4632_v60  ;;  %v4635_v61 = vpop.f32.mrb[2].mxu1  ;;  %v4654_v27 = vsel %vm437_vm1, %v4627_v59, -inf }
 0x1ba   : > { %v4639_v63 = vpop.f32.mrb[3].mxu1  ;;  %v4700_v62 = vsel %vm437_vm1, %v4635_v61, -inf }
 0x1bb   : > { %v4746_v12 = vsel %vm437_vm1, %v4639_v63, -inf }
 0x1bd   : > { %470 = vmax.xlane.f32.xlu1 %v4646_v21 }
 0x1bf   : > { %v4649_v29 = vpop.f32.mrb[4].mxu1 }
 0x1c0   : > { %v4659_v37 = vsel %vm437_vm1, %v4649_v29, -inf  ;;  %v4661_v34 = vpop.f32.mrb[5].mxu1 }
 0x1c1   : > { %502 = vmax.xlane.f32.xlu1 %v4654_v27  ;;  %514 = vmax.xlane.f32.xlu0 %v4659_v37  ;;  %v4665_v47 = vpop.f32.mrb[6].mxu1  ;;  %v4670_v44 = vsel %vm437_vm1, %v4661_v34, -inf }
 0x1c2   : > { %v4674_v53 = vpop.f32.mrb[7].mxu1  ;;  %v4679_v3 = vsel %vm437_vm1, %v4665_v47, -inf }
 0x1c3   : > { %v4686_v20 = vsel %vm437_vm1, %v4674_v53, -inf }
 0x1c5   : > { %476 = vmax.xlane.f32.xlu1 %v4691_v19  ;;  %510 = vmax.xlane.f32.xlu0 %v4670_v44 }
 0x1c7   : > { %v4695_v56 = vpop.f32.mrb[8].mxu1 }
 0x1c8   : > { %v4705_v18 = vsel %vm437_vm1, %v4695_v56, -inf  ;;  %v4707_v17 = vpop.f32.mrb[9].mxu1 }
 0x1c9   : > { %508 = vmax.xlane.f32.xlu1 %v4700_v62  ;;  %522 = vmax.xlane.f32.xlu0 %v4705_v18  ;;  %v4711_v16 = vpop.f32.mrb[10].mxu1  ;;  %v4716_v15 = vsel %vm437_vm1, %v4707_v17, -inf }
 0x1ca   : > { %v4720_v13 = vpop.f32.mrb[11].mxu1  ;;  %v4725_v8 = vsel %vm437_vm1, %v4711_v16, -inf }
 0x1cb   : > { %v4732_v7 = vsel %vm437_vm1, %v4720_v13, -inf }
 0x1cd   : > { %472 = vmax.xlane.f32.xlu1 %v4737_v11  ;;  %518 = vmax.xlane.f32.xlu0 %v4716_v15 }
 0x1cf   : > { %v4741_v14 = vpop.f32.mrb[12].mxu1 }
 0x1d0   : > { %v4753_v10 = vpop.f32.mrb[13].mxu1  ;;  %v4758_v9 = vsel %vm437_vm1, %v4741_v14, -inf }
 0x1d1   : > { %504 = vmax.xlane.f32.xlu1 %v4746_v12  ;;  %488 = vmax.xlane.f32.xlu0 %v4751_v6  ;;  %v4762_v5 = vpop.f32.mrb[14].mxu1  ;;  %v4767_v0 = vsel %vm437_vm1, %v4753_v10, -inf }
 0x1d2   : > { %v4771_v1 = vpop.f32.mrb[15].mxu1  ;;  %v4776_v2 = vsel %vm437_vm1, %v4762_v5, -inf }
 0x1d3   : > { %v4783_v28 = vsel %vm437_vm1, %v4771_v1, -inf }
 0x1d5   : > { %482 = vmax.xlane.f32.xlu1 %v4788_v23  ;;  %526 = vmax.xlane.f32.xlu0 %v4767_v0 }
 0x1d9   : > { %478 = vmax.xlane.f32.xlu1 %v4548_v33  ;;  %530 = vmax.xlane.f32.xlu0 %v4758_v9 }
 0x1dd   : > { %484 = vmax.xlane.f32.xlu1 %v4557_v36 }
 0x1e1   : > { %516 = vmax.xlane.f32.xlu1 %v4679_v3 }
 0x1e5   : > { %480 = vmax.xlane.f32.xlu1 %v4564_v38 }
 0x1e9   : > { %512 = vmax.xlane.f32.xlu1 %v4686_v20 }
 0x1ed   : > { %490 = vmax.xlane.f32.xlu1 %v4573_v41 }
 0x1f1   : > { %486 = vmax.xlane.f32.xlu1 %v4580_v43 }
 0x1f5   : > { %492 = vmax.xlane.f32.xlu1 %v4589_v46 }
 0x1f9   : > { %524 = vmax.xlane.f32.xlu1 %v4725_v8 }
 0x1fd   : > { %520 = vmax.xlane.f32.xlu1 %v4732_v7 }
 0x201   : > { %498 = vmax.xlane.f32.xlu1 %v4600_v50 }
 0x205   : > { %494 = vmax.xlane.f32.xlu1 %v4607_v52 }
 0x209   : > { %500 = vmax.xlane.f32.xlu1 %v4616_v55 }
 0x20d   : > { %496 = vmax.xlane.f32.xlu1 %v4623_v57 }
 0x211   : > { %528 = vmax.xlane.f32.xlu1 %v4783_v28 }
 0x215   : > { %532 = vmax.xlane.f32.xlu1 %v4776_v2 }
 0x226   : > { %v475_v22 = vpop.xlane.xlu1 %474 }
 0x227   : > { %v536_v24 = vsub.f32 %v4528_v25, %v475_v22 }
 0x229   : > { %v570_v4 = vmul.f32 1.442695, %v536_v24 }
 0x22b   : > { %3461 = vpow2.f32 %v570_v4 }
 0x235   : > { %v4810_v26 = vpop.eup %3461 }
 0x236   : > { %634 = vadd.xlane.f32.xlu0 %v4810_v26 }
 0x246   : > { %v507_v31 = vpop.xlane.xlu1 %506 }
 0x247   : > { %v552_v35 = vsub.f32 %v4632_v60, %v507_v31 }
 0x249   : > { %v602_v30 = vmul.f32 1.442695, %v552_v35 }
 0x24a   : > { %v471_v32 = vpop.xlane.xlu1 %470 }
 0x24b   : > { %3463 = vpow2.f32 %v602_v30  ;;  %v534_v40 = vsub.f32 %v4646_v21, %v471_v32 }
 0x24d   : > { %v566_v45 = vmul.f32 1.442695, %v534_v40 }
 0x24e   : > { %v503_v39 = vpop.xlane.xlu1 %502 }
 0x24f   : > { %3465 = vpow2.f32 %v566_v45  ;;  %v550_v42 = vsub.f32 %v4654_v27, %v503_v39  ;;  %v515_v45 = vpop.xlane.xlu0 %514 }
 0x251   : > { %v598_v25 = vmul.f32 1.442695, %v550_v42 }
 0x252   : > { %v477_v24 = vpop.xlane.xlu1 %476 }
 0x253   : > { %3467 = vpow2.f32 %v598_v25  ;;  %v537_v4 = vsub.f32 %v4691_v19, %v477_v24 }
 0x255   : > { %v4817_v22 = vpop.eup %3463  ;;  %v572_v49 = vmul.f32 1.442695, %v537_v4 }
 0x256   : > { %v509_v54 = vpop.xlane.xlu1 %508  ;;  %666 = vadd.xlane.f32.xlu0 %v4817_v22 }
 0x257   : > { %3469 = vpow2.f32 %v572_v49  ;;  %v553_v30 = vsub.f32 %v4700_v62, %v509_v54  ;;  %v556_v62 = vsub.f32 %v4659_v37, %v515_v45 }
 0x259   : > { %v4821_v31 = vpop.eup %3465  ;;  %v604_v32 = vmul.f32 1.442695, %v553_v30  ;;  %v610_v4 = vmul.f32 1.442695, %v556_v62 }
 0x25a   : > { %v473_v35 = vpop.xlane.xlu1 %472  ;;  %630 = vadd.xlane.f32.xlu0 %v4821_v31 }
 0x25b   : > { %3471 = vpow2.f32 %v604_v32  ;;  %v535_v27 = vsub.f32 %v4737_v11, %v473_v35 }
 0x25d   : > { %v4825_v39 = vpop.eup %3467  ;;  %v568_v19 = vmul.f32 1.442695, %v535_v27 }
 0x25e   : > { %v505_v40 = vpop.xlane.xlu1 %504  ;;  %662 = vadd.xlane.f32.xlu0 %v4825_v39 }
 0x25f   : > { %3473 = vpow2.f32 %v568_v19  ;;  %v551_v42 = vsub.f32 %v4746_v12, %v505_v40  ;;  %v511_v12 = vpop.xlane.xlu0 %510 }
 0x260   : > { %v554_v35 = vsub.f32 %v4670_v44, %v511_v12 }
 0x261   : > { %v4829_v49 = vpop.eup %3469  ;;  %v600_v54 = vmul.f32 1.442695, %v551_v42 }
 0x262   : > { %v483_v60 = vpop.xlane.xlu1 %482  ;;  %636 = vadd.xlane.f32.xlu1 %v4829_v49  ;;  %v606_v42 = vmul.f32 1.442695, %v554_v35 }
 0x263   : > { %3475 = vpow2.f32 %v600_v54  ;;  %v540_v11 = vsub.f32 %v4788_v23, %v483_v60 }
 0x265   : > { %v4834_v21 = vpop.eup %3471  ;;  %v578_v25 = vmul.f32 1.442695, %v540_v11 }
 0x266   : > { %v479_v24 = vpop.xlane.xlu1 %478  ;;  %668 = vadd.xlane.f32.xlu1 %v4834_v21 }
 0x267   : > { %3477 = vpow2.f32 %v578_v25  ;;  %v538_v30 = vsub.f32 %v4548_v33, %v479_v24 }
 0x268   : > { %3479 = vpow2.f32 %v610_v4  ;;  %v523_v4 = vpop.xlane.xlu0 %522 }
 0x269   : > { %v4838_v32 = vpop.eup %3473  ;;  %v574_v27 = vmul.f32 1.442695, %v538_v30 }
 0x26a   : > { %v485_v37 = vpop.xlane.xlu1 %484  ;;  %632 = vadd.xlane.f32.xlu1 %v4838_v32 }
 0x26b   : > { %v541_v23 = vsub.f32 %v4557_v36, %v485_v37  ;;  %3481 = vpow2.f32 %v574_v27 }
 0x26d   : > { %v4843_v19 = vpop.eup %3475  ;;  %v580_v40 = vmul.f32 1.442695, %v541_v23 }
 0x26e   : > { %v517_v45 = vpop.xlane.xlu1 %516  ;;  %664 = vadd.xlane.f32.xlu1 %v4843_v19 }
 0x26f   : > { %3483 = vpow2.f32 %v580_v40  ;;  %v557_v33 = vsub.f32 %v4679_v3, %v517_v45  ;;  %v519_v40 = vpop.xlane.xlu0 %518 }
 0x270   : > { %3485 = vpow2.f32 %v606_v42 }
 0x271   : > { %v4847_v54 = vpop.eup %3477  ;;  %v612_v44 = vmul.f32 1.442695, %v557_v33 }
 0x272   : > { %v481_v60 = vpop.xlane.xlu1 %480  ;;  %642 = vadd.xlane.f32.xlu0 %v4847_v54  ;;  %v4851_v62 = vpop.eup %3479 }
 0x273   : > { %3487 = vpow2.f32 %v612_v44  ;;  %v539_v36 = vsub.f32 %v4564_v38, %v481_v60  ;;  %v560_v38 = vsub.f32 %v4705_v18, %v523_v4  ;;  %v558_v18 = vsub.f32 %v4716_v15, %v519_v40 }
 0x275   : > { %v576_v11 = vmul.f32 1.442695, %v539_v36  ;;  %v4855_v3 = vpop.eup %3481  ;;  %v618_v45 = vmul.f32 1.442695, %v560_v38  ;;  %v614_v4 = vmul.f32 1.442695, %v558_v18 }
 0x276   : > { %v513_v25 = vpop.xlane.xlu1 %512  ;;  %674 = vadd.xlane.f32.xlu0 %v4851_v62 }
 0x277   : > { %3489 = vpow2.f32 %v576_v11  ;;  %v555_v24 = vsub.f32 %v4686_v20, %v513_v25  ;;  %v489_v11 = vpop.xlane.xlu0 %488 }
 0x279   : > { %v4857_v12 = vpop.eup %3483  ;;  %v608_v30 = vmul.f32 1.442695, %v555_v24 }
 0x27a   : > { %v491_v35 = vpop.xlane.xlu1 %490  ;;  %644 = vadd.xlane.f32.xlu1 %v4857_v12  ;;  %638 = vadd.xlane.f32.xlu0 %v4855_v3  ;;  %v4863_v37 = vpop.eup %3485 }
 0x27b   : > { %3491 = vpow2.f32 %v608_v30  ;;  %v544_v27 = vsub.f32 %v4573_v41, %v491_v35 }
 0x27d   : > { %v4865_v23 = vpop.eup %3487  ;;  %v586_v20 = vmul.f32 1.442695, %v544_v27 }
 0x27e   : > { %v487_v42 = vpop.xlane.xlu1 %486  ;;  %676 = vadd.xlane.f32.xlu1 %v4865_v23  ;;  %670 = vadd.xlane.f32.xlu0 %v4863_v37 }
 0x27f   : > { %3493 = vpow2.f32 %v586_v20  ;;  %v542_v33 = vsub.f32 %v4580_v43, %v487_v42  ;;  %v543_v43 = vsub.f32 %v4751_v6, %v489_v11  ;;  %v527_v42 = vpop.xlane.xlu0 %526 }
 0x280   : > { %3495 = vpow2.f32 %v618_v45 }
 0x281   : > { %v4870_v44 = vpop.eup %3489  ;;  %v582_v41 = vmul.f32 1.442695, %v542_v33 }
 0x282   : > { %v493_v60 = vpop.xlane.xlu1 %492  ;;  %640 = vadd.xlane.f32.xlu1 %v4870_v44 }
 0x283   : > { %v545_v36 = vsub.f32 %v4589_v46, %v493_v60  ;;  %3497 = vpow2.f32 %v582_v41  ;;  %v584_v46 = vmul.f32 1.442695, %v543_v43  ;;  %v562_v60 = vsub.f32 %v4767_v0, %v527_v42 }
 0x285   : > { %v4875_v25 = vpop.eup %3491  ;;  %v588_v24 = vmul.f32 1.442695, %v545_v36 }
 0x286   : > { %v525_v30 = vpop.xlane.xlu1 %524  ;;  %672 = vadd.xlane.f32.xlu1 %v4875_v25 }
 0x287   : > { %3499 = vpow2.f32 %v588_v24  ;;  %v561_v15 = vsub.f32 %v4725_v8, %v525_v30  ;;  %v622_v30 = vmul.f32 1.442695, %v562_v60 }
 0x288   : > { %3501 = vpow2.f32 %v614_v4 }
 0x289   : > { %v4880_v35 = vpop.eup %3493  ;;  %v620_v38 = vmul.f32 1.442695, %v561_v15 }
 0x28a   : > { %v521_v27 = vpop.xlane.xlu1 %520  ;;  %650 = vadd.xlane.f32.xlu0 %v4880_v35  ;;  %v4884_v40 = vpop.eup %3495 }
 0x28b   : > { %3503 = vpow2.f32 %v620_v38  ;;  %v559_v20 = vsub.f32 %v4732_v7, %v521_v27  ;;  %v531_v7 = vpop.xlane.xlu0 %530 }
 0x28c   : > { %3505 = vpow2.f32 %v584_v46  ;;  %v564_v43 = vsub.f32 %v4758_v9, %v531_v7 }
 0x28d   : > { %v616_v45 = vmul.f32 1.442695, %v559_v20  ;;  %v4888_v8 = vpop.eup %3497 }
 0x28e   : > { %v499_v33 = vpop.xlane.xlu1 %498  ;;  %682 = vadd.xlane.f32.xlu0 %v4884_v40 }
 0x28f   : > { %v548_v6 = vsub.f32 %v4600_v50, %v499_v33  ;;  %3507 = vpow2.f32 %v616_v45 }
 0x291   : > { %v4890_v18 = vpop.eup %3499  ;;  %v594_v41 = vmul.f32 1.442695, %v548_v6 }
 0x292   : > { %v495_v36 = vpop.xlane.xlu1 %494  ;;  %652 = vadd.xlane.f32.xlu1 %v4890_v18  ;;  %646 = vadd.xlane.f32.xlu0 %v4888_v8  ;;  %v4896_v24 = vpop.eup %3501 }
 0x293   : > { %3509 = vpow2.f32 %v594_v41  ;;  %v546_v11 = vsub.f32 %v4607_v52, %v495_v36  ;;  %v626_v52 = vmul.f32 1.442695, %v564_v43 }
 0x295   : > { %v4898_v50 = vpop.eup %3503  ;;  %v590_v4 = vmul.f32 1.442695, %v546_v11 }
 0x296   : > { %v501_v15 = vpop.xlane.xlu1 %500  ;;  %684 = vadd.xlane.f32.xlu1 %v4898_v50  ;;  %678 = vadd.xlane.f32.xlu0 %v4896_v24  ;;  %v4904_v38 = vpop.eup %3505 }
 0x297   : > { %3511 = vpow2.f32 %v590_v4  ;;  %v549_v0 = vsub.f32 %v4616_v55, %v501_v15 }
 0x298   : > { %3513 = vpow2.f32 %v622_v30 }
 0x299   : > { %v596_v27 = vmul.f32 1.442695, %v549_v0  ;;  %v4908_v9 = vpop.eup %3507 }
 0x29a   : > { %v497_v46 = vpop.xlane.xlu1 %496  ;;  %648 = vadd.xlane.f32.xlu1 %v4904_v38 }
 0x29b   : > { %3515 = vpow2.f32 %v596_v27  ;;  %v547_v20 = vsub.f32 %v4623_v57, %v497_v46 }
 0x29c   : > { %3517 = vpow2.f32 %v626_v52 }
 0x29d   : > { %v4910_v42 = vpop.eup %3509  ;;  %v592_v45 = vmul.f32 1.442695, %v547_v20 }
 0x29e   : > { %v529_v33 = vpop.xlane.xlu1 %528  ;;  %658 = vadd.xlane.f32.xlu0 %v4910_v42  ;;  %680 = vadd.xlane.f32.xlu1 %v4908_v9 }
 0x29f   : > { %3519 = vpow2.f32 %v592_v45  ;;  %v563_v55 = vsub.f32 %v4783_v28, %v529_v33 }
 0x2a1   : > { %v4915_v6 = vpop.eup %3511  ;;  %v624_v41 = vmul.f32 1.442695, %v563_v55 }
 0x2a2   : > { %v533_v60 = vpop.xlane.xlu1 %532  ;;  %654 = vadd.xlane.f32.xlu0 %v4915_v6  ;;  %v4919_v36 = vpop.eup %3513 }
 0x2a3   : > { %3521 = vpow2.f32 %v624_v41  ;;  %v565_v57 = vsub.f32 %v4776_v2, %v533_v60 }
 0x2a5   : > { %v4921_v7 = vpop.eup %3515  ;;  %v628_v11 = vmul.f32 1.442695, %v565_v57 }
 0x2a6   : > { %660 = vadd.xlane.f32.xlu1 %v4921_v7  ;;  %686 = vadd.xlane.f32.xlu0 %v4919_v36  ;;  %v4925_v28 = vpop.eup %3517 }
 0x2a7   : > { %3523 = vpow2.f32 %v628_v11 }
 0x2a9   : > { %v4927_v4 = vpop.eup %3519 }
 0x2aa   : > { %656 = vadd.xlane.f32.xlu1 %v4927_v4  ;;  %690 = vadd.xlane.f32.xlu0 %v4925_v28 }
 0x2ad   : > { %v4931_v30 = vpop.eup %3521 }
 0x2ae   : > { %688 = vadd.xlane.f32.xlu1 %v4931_v30 }
 0x2b1   : > { %v4934_v2 = vpop.eup %3523 }
 0x2b2   : > { %692 = vadd.xlane.f32.xlu1 %v4934_v2 }
 0x2c3   : > { %v635_v43 = vpop.xlane.xlu0 %634 }
 0x2c4   : > { %3525 = vrcp.f32 %v635_v43 }
 0x2ce   : > { %v3526_v15 = vpop.eup %3525 }
 0x2cf   : > { %v4938_v0 = vmul.f32 %v3526_v15, %v4810_v26  }
 0x2e3   : > { %v667_v27 = vpop.xlane.xlu0 %666 }
 0x2e4   : > { %3527 = vrcp.f32 %v667_v27 }
 0x2e7   : > { %v631_v52 = vpop.xlane.xlu0 %630 }
 0x2e8   : > { %3529 = vrcp.f32 %v631_v52 }
 0x2eb   : > { %v663_v46 = vpop.xlane.xlu0 %662 }
 0x2ec   : > { %3531 = vrcp.f32 %v663_v46 }
 0x2ee   : > { %v3528_v20 = vpop.eup %3527 }
 0x2ef   : > { %v4941_v45 = vmul.f32 %v3528_v20, %v4817_v22   ;;  %v637_v33 = vpop.xlane.xlu1 %636 }
 0x2f0   : > { %3533 = vrcp.f32 %v637_v33 }
 0x2f2   : > { %v3530_v55 = vpop.eup %3529 }
 0x2f3   : > { %v4944_v41 = vmul.f32 %v3530_v55, %v4821_v31   ;;  %v669_v60 = vpop.xlane.xlu1 %668 }
 0x2f4   : > { %3535 = vrcp.f32 %v669_v60 }
 0x2f6   : > { %v3532_v26 = vpop.eup %3531 }
 0x2f7   : > { %v4947_v57 = vmul.f32 %v3532_v26, %v4825_v39   ;;  %v633_v11 = vpop.xlane.xlu1 %632 }
 0x2f8   : > { %3537 = vrcp.f32 %v633_v11 }
 0x2fa   : > { %v3534_v43 = vpop.eup %3533 }
 0x2fb   : > { %v4950_v15 = vmul.f32 %v3534_v43, %v4829_v49   ;;  %v665_v22 = vpop.xlane.xlu1 %664 }
 0x2fc   : > { %3539 = vrcp.f32 %v665_v22 }
 0x2fe   : > { %v3536_v27 = vpop.eup %3535 }
 0x2ff   : > { %v4953_v52 = vmul.f32 %v3536_v27, %v4834_v21   ;;  %v643_v31 = vpop.xlane.xlu0 %642 }
 0x300   : > { %3541 = vrcp.f32 %v643_v31 }
 0x302   : > { %v3538_v46 = vpop.eup %3537 }
 0x303   : > { %v4956_v20 = vmul.f32 %v3538_v46, %v4838_v32   ;;  %v675_v39 = vpop.xlane.xlu0 %674 }
 0x304   : > { %3543 = vrcp.f32 %v675_v39 }
 0x306   : > { %v3540_v33 = vpop.eup %3539 }
 0x307   : > { %v4959_v55 = vmul.f32 %v3540_v33, %v4843_v19   ;;  %v645_v49 = vpop.xlane.xlu1 %644  ;;  %v639_v60 = vpop.xlane.xlu0 %638 }
 0x308   : > { %3545 = vrcp.f32 %v645_v49 }
 0x309   : > { %3547 = vrcp.f32 %v639_v60 }
 0x30a   : > { %v3542_v26 = vpop.eup %3541 }
 0x30b   : > { %v4962_v21 = vmul.f32 %v3542_v26, %v4847_v54   ;;  %v677_v11 = vpop.xlane.xlu1 %676  ;;  %v671_v43 = vpop.xlane.xlu0 %670 }
 0x30c   : > { %3549 = vrcp.f32 %v677_v11 }
 0x30d   : > { %3551 = vrcp.f32 %v671_v43 }
 0x30e   : > { %v3544_v32 = vpop.eup %3543 }
 0x30f   : > { %v4965_v22 = vmul.f32 %v3544_v32, %v4851_v62   ;;  %v641_v27 = vpop.xlane.xlu1 %640 }
 0x310   : > { %3553 = vrcp.f32 %v641_v27 }
 0x312   : > { %v3546_v19 = vpop.eup %3545 }
 0x313   : > { %v3548_v31 = vpop.eup %3547  ;;  %v4968_v46 = vmul.f32 %v3546_v19, %v4857_v12   ;;  %v673_v39 = vpop.xlane.xlu1 %672 }
 0x314   : > { %v4971_v33 = vmul.f32 %v3548_v31, %v4855_v3   ;;  %3555 = vrcp.f32 %v673_v39 }
 0x316   : > { %v3550_v54 = vpop.eup %3549 }
 0x317   : > { %v3552_v49 = vpop.eup %3551  ;;  %v4974_v60 = vmul.f32 %v3550_v54, %v4865_v23   ;;  %v651_v26 = vpop.xlane.xlu0 %650 }
 0x318   : > { %v4977_v62 = vmul.f32 %v3552_v49, %v4863_v37   ;;  %3557 = vrcp.f32 %v651_v26 }
 0x31a   : > { %v3554_v11 = vpop.eup %3553 }
 0x31b   : > { %v4980_v43 = vmul.f32 %v3554_v11, %v4870_v44   ;;  %v683_v12 = vpop.xlane.xlu0 %682 }
 0x31c   : > { %3559 = vrcp.f32 %v683_v12 }
 0x31e   : > { %v3556_v32 = vpop.eup %3555 }
 0x31f   : > { %v4983_v3 = vmul.f32 %v3556_v32, %v4875_v25   ;;  %v653_v27 = vpop.xlane.xlu1 %652  ;;  %v647_v19 = vpop.xlane.xlu0 %646 }
 0x320   : > { %3561 = vrcp.f32 %v653_v27 }
 0x321   : > { %3563 = vrcp.f32 %v647_v19 }
 0x322   : > { %v3558_v23 = vpop.eup %3557 }
 0x323   : > { %v4986_v31 = vmul.f32 %v3558_v23, %v4880_v35   ;;  %v685_v37 = vpop.xlane.xlu1 %684  ;;  %v679_v39 = vpop.xlane.xlu0 %678 }
 0x324   : > { %3565 = vrcp.f32 %v685_v37 }
 0x325   : > { %3567 = vrcp.f32 %v679_v39 }
 0x326   : > { %v3560_v44 = vpop.eup %3559 }
 0x327   : > { %v4989_v54 = vmul.f32 %v3560_v44, %v4884_v40   ;;  %v649_v49 = vpop.xlane.xlu1 %648 }
 0x328   : > { %3569 = vrcp.f32 %v649_v49 }
 0x32a   : > { %v3562_v25 = vpop.eup %3561 }
 0x32b   : > { %v3564_v26 = vpop.eup %3563  ;;  %v4992_v11 = vmul.f32 %v3562_v25, %v4890_v18   ;;  %v681_v12 = vpop.xlane.xlu1 %680 }
 0x32c   : > { %v659_v32 = vpop.xlane.xlu0 %658  ;;  %v4995_v35 = vmul.f32 %v3564_v26, %v4888_v8   ;;  %3571 = vrcp.f32 %v681_v12 }
 0x32d   : > { %3573 = vrcp.f32 %v659_v32 }
 0x32e   : > { %v3566_v27 = vpop.eup %3565 }
 0x32f   : > { %v3568_v19 = vpop.eup %3567  ;;  %v753_v23 = vmul.f32 %v3566_v27, %v4898_v50  }
 0x330   : > { %v655_v40 = vpop.xlane.xlu0 %654  ;;  %v750_v37 = vmul.f32 %v3568_v19, %v4896_v24  }
 0x331   : > { %3575 = vrcp.f32 %v655_v40 }
 0x332   : > { %v3570_v39 = vpop.eup %3569 }
 0x333   : > { %v5000_v44 = vmul.f32 %v3570_v39, %v4904_v38   ;;  %v661_v18 = vpop.xlane.xlu1 %660 }
 0x334   : > { %v687_v49 = vpop.xlane.xlu0 %686  ;;  %3577 = vrcp.f32 %v661_v18 }
 0x335   : > { %3579 = vrcp.f32 %v687_v49 }
 0x336   : > { %v3572_v8 = vpop.eup %3571 }
 0x337   : > { %v3574_v25 = vpop.eup %3573  ;;  %v751_v26 = vmul.f32 %v3572_v8, %v4908_v9   ;;  %v657_v12 = vpop.xlane.xlu1 %656 }
 0x338   : > { %v691_v32 = vpop.xlane.xlu0 %690  ;;  %v740_v50 = vmul.f32 %v3574_v25, %v4910_v42   ;;  %3581 = vrcp.f32 %v657_v12 }
 0x339   : > { %3583 = vrcp.f32 %v691_v32 }
 0x33b   : > { %v3576_v24 = vpop.eup %3575  ;;  %v689_v19 = vpop.xlane.xlu1 %688 }
 0x33c   : > { %v738_v27 = vmul.f32 %v3576_v24, %v4915_v6   ;;  %3585 = vrcp.f32 %v689_v19  ;;  %v6278_v19 = vld [vmem:[#allocation33_spill] sm:$0xff] }
 0x33e   : > { %v3578_v38 = vpop.eup %3577 }
 0x33f   : > { %v3580_v40 = vpop.eup %3579  ;;  %v741_v39 = vmul.f32 %v3578_v38, %v4921_v7   ;;  %v693_v18 = vpop.xlane.xlu1 %692  ;;  %v6254_v7 = vpack.c.bf16 %v4762_v5, %v4741_v14   ;;  %v6258_v5 = vpack.c.bf16 %v4665_v47, %v4649_v29   ;;  %v6262_v14 = vpack.c.bf16 %v4602_v51, %v4593_v48   ;;  %v6267_v47 = vld [vmem:[#allocation39_spill] sm:$0xff]  ;;  %v6275_v51 = vld [vmem:[#allocation38_spill] sm:$0xff] }
 0x340   : > { %v754_v49 = vmul.f32 %v3580_v40, %v4919_v36   ;;  %3587 = vrcp.f32 %v693_v18  ;;  %v6255_v36 = vpack.c.bf16 %v4771_v1, %v4753_v10   ;;  %v6259_v1 = vpack.c.bf16 %v4674_v53, %v4661_v34   ;;  %v6266_v34 = vld [vmem:[#allocation41_spill] sm:$0xff]  ;;  %v6279_v38 = vld [vmem:[#allocation31_spill] sm:$0xff]  ;;  %v6281_v18 = vld [vmem:[#allocation34_spill] sm:$0xff] }
 0x341   : > { %v6260_v10 = vpack.c.bf16 %v4635_v61, %v4625_v58   ;;  %v6268_v53 = vpack.c.bf16 %v6266_v34, %v6267_v47   ;;  %v6270_v58 = vld [vmem:[#allocation40_spill] sm:$0xff]  ;;  %v6272_v61 = vld [vmem:[#allocation37_spill] sm:$0xff]  ;;  %v6280_v40 = vpack.c.bf16 %v6278_v19, %v6279_v38  }
 0x342   : > { %v3582_v9 = vpop.eup %3581 }
 0x343   : > { %v3584_v8 = vpop.eup %3583  ;;  %v739_v42 = vmul.f32 %v3582_v9, %v4927_v4   ;;  %v6257_v4 = vpack.c.bf16 %v4720_v13, %v4707_v17   ;;  %v6261_v13 = vpack.c.bf16 %v4639_v63, %v4627_v59   ;;  %v6264_v17 = vld [vmem:[#allocation43_spill] sm:$0xff]  ;;  %v6282_v9 = vld [vmem:[#allocation32_spill] sm:$0xff] }
 0x344   : > { %v756_v25 = vmul.f32 %v3584_v8, %v4925_v28   ;;  %v6256_v28 = vpack.c.bf16 %v4711_v16, %v4695_v56   ;;  %v6263_v16 = vld [vmem:[#allocation44_spill] sm:$0xff]  ;;  %v6269_v56 = vld [vmem:[#allocation42_spill] sm:$0xff]  ;;  %v6273_v63 = vld [vmem:[#allocation35_spill] sm:$0xff]  ;;  %v6283_v8 = vpack.c.bf16 %v6281_v18, %v6282_v9  }
 0x345   : > { %v6265_v29 = vpack.c.bf16 %v6263_v16, %v6264_v17   ;;  %v6271_v59 = vpack.c.bf16 %v6269_v56, %v6270_v58   ;;  %v6274_v48 = vpack.c.bf16 %v6272_v61, %v6273_v63   ;;  %6284 = vst [vmem:[#allocation44_spill] sm:$0xff] %v4944_v41 }
 0x346   : > { %v3586_v12 = vpop.eup %3585 }
 0x347   : > { %v755_v6 = vmul.f32 %v3586_v12, %v4931_v30   ;;  %v6276_v30 = vld [vmem:[#allocation36_spill] sm:$0xff]  ;;  %v6285_v12 = vld [vmem:[#allocation13_spill] sm:$0xff] }
 0x34a   : > { %v3588_v32 = vpop.eup %3587 }
 0x34b   : > { %v757_v24 = vmul.f32 %v3588_v32, %v4934_v2   ;;  %v6277_v2 = vpack.c.bf16 %v6275_v51, %v6276_v30   ;;  %v6286_v32 = vld [vmem:[#allocation12_spill] sm:$0xff] }
 0x34c LB: >> { %v6288_v41 = vld [vmem:[#allocation44_spill] sm:$0xff]  ;;  %6290 = vst [vmem:[#allocation45_spill] sm:$0xff] %v4253_v32  ;;  %v5343_v16 = vpack.c.bf16 %v4249_v12, %v4253_v32  ;;  %v6292_v30 = vld [vmem:[#allocation14_spill] sm:$0xff]  ;;  %vm4264_vm2 = vmmov 0   ;;  %s779_s4 = sadd.s32 1, %s4257_s17   ;;  %s4257_s17 = sphi %s5186_s17, %s6487_s17   ;;  %v4253_v32 = vphi %v6286_v32, %v5652_v32   ;;  %v4249_v12 = vphi %v6285_v12, %v5654_v12   ;;  %v4241_v20 = vphi %v4956_v20, %v6484_v20   ;;  %v4237_v0 = vphi %v4938_v0, %v6483_v0   ;;  %v4233_v15 = vphi %v4950_v15, %v6482_v15   ;;  %v4229_v33 = vphi %v4971_v33, %v6481_v33   ;;  %v4225_v43 = vphi %v4980_v43, %v6480_v43   ;;  %v4221_v21 = vphi %v4962_v21, %v6479_v21   ;;  %v4217_v46 = vphi %v4968_v46, %v6478_v46   ;;  %v4213_v35 = vphi %v4995_v35, %v6477_v35   ;;  %v4209_v44 = vphi %v5000_v44, %v6476_v44   ;;  %v4205_v31 = vphi %v4986_v31, %v6475_v31   ;;  %v4201_v11 = vphi %v4992_v11, %v6474_v11   ;;  %v4197_v27 = vphi %v738_v27, %v6473_v27   ;;  %v4193_v42 = vphi %v739_v42, %v6472_v42   ;;  %v4189_v50 = vphi %v740_v50, %v6471_v50   ;;  %v4185_v39 = vphi %v741_v39, %v6470_v39   ;;  %v4181_v57 = vphi %v4947_v57, %v6469_v57   ;;  %v4177_v55 = vphi %v4959_v55, %v6468_v55   ;;  %v4173_v45 = vphi %v4941_v45, %v6467_v45   ;;  %v4169_v52 = vphi %v4953_v52, %v6466_v52   ;;  %v4165_v62 = vphi %v4977_v62, %v6465_v62   ;;  %v4161_v3 = vphi %v4983_v3, %v6464_v3   ;;  %v4157_v22 = vphi %v4965_v22, %v6463_v22   ;;  %v4153_v60 = vphi %v4974_v60, %v6462_v60   ;;  %v4149_v37 = vphi %v750_v37, %v6461_v37   ;;  %v4145_v26 = vphi %v751_v26, %v6460_v26   ;;  %v4141_v54 = vphi %v4989_v54, %v6459_v54   ;;  %v4137_v23 = vphi %v753_v23, %v6458_v23   ;;  %v4133_v49 = vphi %v754_v49, %v6457_v49   ;;  %v4129_v6 = vphi %v755_v6, %v6456_v6   ;;  %v4125_v25 = vphi %v756_v25, %v6455_v25   ;;  %v4121_v24 = vphi %v757_v24, %v6454_v24   ;;  %v4117_v8 = vphi %v6283_v8, %v6453_v8   ;;  %v4113_v40 = vphi %v6280_v40, %v6452_v40   ;;  %v4109_v2 = vphi %v6277_v2, %v6451_v2   ;;  %v4105_v48 = vphi %v6274_v48, %v6450_v48   ;;  %v4101_v59 = vphi %v6271_v59, %v6449_v59   ;;  %v4097_v53 = vphi %v6268_v53, %v6448_v53   ;;  %v4093_v29 = vphi %v6265_v29, %v6447_v29   ;;  %v4089_v14 = vphi %v6262_v14, %v6446_v14   ;;  %v4085_v13 = vphi %v6261_v13, %v6445_v13   ;;  %v4081_v10 = vphi %v6260_v10, %v6444_v10   ;;  %v4077_v1 = vphi %v6259_v1, %v6443_v1   ;;  %v4073_v5 = vphi %v6258_v5, %v6441_v5   ;;  %v4069_v4 = vphi %v6257_v4, %v6440_v4   ;;  %v4065_v28 = vphi %v6256_v28, %v6438_v28   ;;  %v4061_v36 = vphi %v6255_v36, %v6436_v36   ;;  %v4057_v7 = vphi %v6254_v7, %v6434_v7  }
 0x34d   : >> { %6289 = vst [vmem:[#allocation44_spill] sm:$0xff] %v4249_v12  ;;  %v831_v19 = vpack.c.bf16 %v4241_v20, %v6288_v41  ;;  %p5727_p4 = scmp.ge.s32.totalorder %s779_s4, 7   ;;  %s6487_s17 = smov %s779_s4 }
 0x34e   : >> { %6291 = vst [vmem:[#allocation46_spill] sm:$0xff] %v5343_v16  ;;  %847 = vxpose.xlu0.c.b16.start.end [1/1] (short) %v5343_v16, 128  ;;  %2795 = vmatprep.subr.bf16.mxu0 %v5343_v16  ;;  %s2547_s27 = sshll.u32 (%p5727_p4), %s4304_s13, 8  ;;  %s2238_s22 = sshll.u32 (%p5727_p4), %s5013_s15, 4  ;;  %s6059_s22 = int_to_ptr.vmem [resolvable:$true] %s2238_s22 }
 0x34f   : >> { %2796 = vmatpush3.bf16.msra.mxu0 %v5343_v16  ;;  %2829 = vmatprep.mubr.bf16.mxu1 %v831_v19  ;;  %s6057_s6 = scalar_lea.hbm (%p5727_p4), %s6107_s2, %s2547_s27  ;;  %s2225_s7 = scalar_lea.sflag (%p5727_p4), [#allocation4], %s4428_s19 }
 0x350   : > { %s3779_s13 = scalar_lea.vmem (%p5727_p4), %s6059_s22, 256  ;;  %s4265_s20 = smov (%p5727_p4), [#allocation7]  }
 0x351   : > { %p3780_p6 = scmp.ne.s32.totalorder (%p5727_p4), %s6059_s22, %s3779_s13  ;;  %s3783_s18 = sshll.u32 (%p5727_p4), %s4265_s20, 4  ;;  %s3784_s18 = int_to_ptr.vmem [resolvable:$false] %s3783_s18 }
 0x352   : > { %s3785_s24 = scalar_lea.vmem (%p5727_p4), %s3784_s18, 512  ;;  %p3786_p13 = scmp.lt.s32.totalorder (%p5727_p4), %s6059_s22, %s3784_s18 }
 0x353   : > { %p3781_p8 = pnand (%p5727_p4), %p3780_p6, %p4377_p12  ;;  %p3787_p3 = scmp.lt.s32.totalorder (%p5727_p4), %s3785_s24, %s3779_s13 }
 0x355   : > { %p3782_p10 = pneg (%p5727_p4), %p3781_p8  ;;  %p3788_p7 = por (%p5727_p4), %p3787_p3, %p3786_p13 }
 0x357   : > { %p3789_p9 = pnand (%p5727_p4), %p3788_p7, %p3782_p10 }
 0x3b4   : >> { %v855_v17 = vpop.trf.xlu0 }
 0x3b5   : >> { %2797 = vmatprep.mubr.msk.bf16.mxu0 %vm225_vm0, %v855_v17 }
 0x3b8   : >> { %v856_v34 = vpop.trf.xlu0 }
 0x3b9   : >> { %2798 = vmatmul.mubr.msk.bf16.vlgmr.msra.gmra.mrb[0].mxu0 %vm225_vm0, %v856_v34 }
 0x3bc   : >> { %v857_v47 = vpop.trf.xlu0 }
 0x3bd   : >> { %2801 = vmatprep.mubr.msk.bf16.mxu0 %vm225_vm0, %v857_v47 }
 0x3c0   : >> { %v858_v56 = vpop.trf.xlu0 }
 0x3c1   : >> { %2802 = vmatmul.mubr.msk.bf16.gmra.mrb[4].mxu0 %vm225_vm0, %v858_v56 }
 0x3c4   : >> { %v859_v58 = vpop.trf.xlu0 }
 0x3c5   : >> { %2805 = vmatprep.mubr.msk.bf16.mxu0 %vm225_vm0, %v859_v58 }
 0x3c8   : >> { %v860_v61 = vpop.trf.xlu0 }
 0x3c9   : >> { %2806 = vmatmul.mubr.msk.bf16.gmra.mrb[8].mxu0 %vm225_vm0, %v860_v61 }
 0x3cc   : >> { %v861_v63 = vpop.trf.xlu0 }
 0x3cd   : >> { %2809 = vmatprep.mubr.msk.bf16.mxu0 %vm225_vm0, %v861_v63 }
 0x3d0   : >> { %v862_v51 = vpop.trf.xlu0 }
 0x3d1   : >> { %2810 = vmatmul.mubr.msk.bf16.gmra.mrb[12].mxu0 %vm225_vm0, %v862_v51 }
 0x3d2   : >> { %1329 = vmatprep.mubr.bf16.mxu0 %v6292_v30 }
 0x48c   : >> { %v2799_v38 = vpop.f32.mrb[0].mxu0 }
 0x48d   : >> { %v921_v18 = vpop.f32.mrb[1].mxu0 }
 0x48e   : >> { %v2800_v9 = vpop.f32.mrb[2].mxu0 }
 0x48f   : >> { %v985_v17 = vpack.c.bf16 %v2800_v9, %v2799_v38  ;;  %v924_v34 = vpop.f32.mrb[3].mxu0 }
 0x490   : >> { %v984_v47 = vpack.c.bf16 %v924_v34, %v921_v18 }
 0x492   : >> { %2813 = vmatprep.subr.bf16.mxu1 %v984_v47 }
 0x493   : >> { %2814 = vmatpush3.bf16.msra.mxu1 %v984_v47 }
 0x494   : >> { %v2803_v56 = vpop.f32.mrb[4].mxu0  ;;  %2815 = vmatprep.subr.bf16.mxu1 %v985_v17 }
 0x495   : >> { %v937_v58 = vpop.f32.mrb[5].mxu0 }
 0x496   : >> { %v2804_v61 = vpop.f32.mrb[6].mxu0 }
 0x497   : >> { %v987_v63 = vpack.c.bf16 %v2804_v61, %v2803_v56  ;;  %v940_v51 = vpop.f32.mrb[7].mxu0  ;;  %2816 = vmatpush3.bf16.msra.mxu1 %v985_v17 }
 0x498   : >> { %v986_v30 = vpack.c.bf16 %v940_v51, %v937_v58  ;;  %v832_v58 = vpack.c.bf16 %v4233_v15, %v4237_v0  ;;  %v837_v51 = vpack.c.bf16 %v4193_v42, %v4197_v27 }
 0x49a   : >> { %2817 = vmatprep.subr.bf16.mxu1 %v986_v30 }
 0x49b   : >> { %2818 = vmatpush3.bf16.msra.mxu1 %v986_v30  ;;  %v838_v30 = vpack.c.bf16 %v4185_v39, %v4189_v50 }
 0x49c   : >> { %v2807_v12 = vpop.f32.mrb[8].mxu0  ;;  %2819 = vmatprep.subr.bf16.mxu1 %v987_v63 }
 0x49d   : >> { %v953_v19 = vpop.f32.mrb[9].mxu0 }
 0x49e   : >> { %v2808_v32 = vpop.f32.mrb[10].mxu0 }
 0x49f   : >> { %v989_v16 = vpack.c.bf16 %v2808_v32, %v2807_v12  ;;  %v956_v38 = vpop.f32.mrb[11].mxu0  ;;  %2820 = vmatpush3.bf16.msra.mxu1 %v987_v63  ;;  %v833_v12 = vpack.c.bf16 %v4225_v43, %v4229_v33  ;;  %v834_v32 = vpack.c.bf16 %v4217_v46, %v4221_v21  ;;  %v835_v63 = vpack.c.bf16 %v4209_v44, %v4213_v35 }
 0x4a0   : >> { %v988_v18 = vpack.c.bf16 %v956_v38, %v953_v19  ;;  %v839_v19 = vpack.c.bf16 %v4177_v55, %v4181_v57  ;;  %v840_v38 = vpack.c.bf16 %v4169_v52, %v4173_v45 }
 0x4a2   : >> { %2821 = vmatprep.subr.bf16.mxu1 %v988_v18 }
 0x4a3   : >> { %2822 = vmatpush3.bf16.msra.mxu1 %v988_v18  ;;  %v841_v18 = vpack.c.bf16 %v4161_v3, %v4165_v62 }
 0x4a4   : >> { %v2811_v9 = vpop.f32.mrb[12].mxu0  ;;  %2823 = vmatprep.subr.bf16.mxu1 %v989_v16 }
 0x4a5   : >> { %v969_v34 = vpop.f32.mrb[13].mxu0 }
 0x4a6   : >> { %v2812_v47 = vpop.f32.mrb[14].mxu0 }
 0x4a7   : >> { %v991_v56 = vpack.c.bf16 %v2812_v47, %v2811_v9  ;;  %v972_v61 = vpop.f32.mrb[15].mxu0  ;;  %2824 = vmatpush3.bf16.msra.mxu1 %v989_v16  ;;  %v836_v16 = vpack.c.bf16 %v4201_v11, %v4205_v31  ;;  %v842_v9 = vpack.c.bf16 %v4153_v60, %v4157_v22  ;;  %v844_v47 = vpack.c.bf16 %v4137_v23, %v4141_v54 }
 0x4a8   : >> { %v990_v17 = vpack.c.bf16 %v972_v61, %v969_v34  ;;  %v843_v34 = vpack.c.bf16 %v4145_v26, %v4149_v37  ;;  %v846_v61 = vpack.c.bf16 %v4121_v24, %v4125_v25 }
 0x4aa   : >> { %2825 = vmatprep.subr.bf16.mxu1 %v990_v17 }
 0x4ab   : >> { %2826 = vmatpush3.bf16.msra.mxu1 %v990_v17 }
 0x4ac   : >> { %2827 = vmatprep.subr.bf16.mxu1 %v991_v56 }
 0x4af   : >> { %2828 = vmatpush3.bf16.msra.mxu1 %v991_v56  ;;  %v845_v56 = vpack.c.bf16 %v4129_v6, %v4133_v49 }
 0x4b2   : >> { %2830 = vmatmul.mubr.bf16.vlgmr.msra.gmra.mrb[0].mxu1 %v832_v58 }
 0x4b3   : >> { %2833 = vmatprep.mubr.bf16.mxu1 %v833_v12 }
 0x4ba   : >> { %2834 = vmatmul.mubr.bf16.gmra.mrb[4].mxu1 %v834_v32 }
 0x4bb   : >> { %2837 = vmatprep.mubr.bf16.mxu1 %v835_v63 }
 0x4c2   : >> { %2838 = vmatmul.mubr.bf16.gmra.mrb[8].mxu1 %v836_v16 }
 0x4c3   : >> { %2841 = vmatprep.mubr.bf16.mxu1 %v837_v51 }
 0x4ca   : >> { %2842 = vmatmul.mubr.bf16.gmra.mrb[12].mxu1 %v838_v30 }
 0x4cb   : >> { %2845 = vmatprep.mubr.bf16.mxu1 %v839_v19  ;;  %v994_v19 = vunpack.c.l.bf16 %v4113_v40 }
 0x4d2   : >> { %2846 = vmatmul.mubr.bf16.gmra.mrb[16].mxu1 %v840_v38  ;;  %v992_v38 = vunpack.c.l.bf16 %v4117_v8 }
 0x4d3   : >> { %2849 = vmatprep.mubr.bf16.mxu1 %v841_v18  ;;  %v995_v18 = vunpack.c.h.bf16 %v4113_v40 }
 0x4da   : >> { %2850 = vmatmul.mubr.bf16.gmra.mrb[20].mxu1 %v842_v9 }
 0x4db   : >> { %2853 = vmatprep.mubr.bf16.mxu1 %v843_v34  ;;  %v993_v34 = vunpack.c.h.bf16 %v4117_v8  ;;  %v996_v8 = vunpack.c.l.bf16 %v4109_v2 }
 0x4dd   : >> { %v1025_v40 = vmul.f32 %v4241_v20, %v993_v34  ;;  %v997_v20 = vunpack.c.h.bf16 %v4109_v2  ;;  %v1028_v34 = vmul.f32 %v4229_v33, %v996_v8 }
 0x4e2   : >> { %2854 = vmatmul.mubr.bf16.gmra.mrb[24].mxu1 %v844_v47 }
 0x4e3   : >> { %2857 = vmatprep.mubr.bf16.mxu1 %v845_v56 }
 0x4ea   : >> { %2858 = vmatmul.mubr.bf16.gmra.mrb[28].mxu1 %v846_v61  ;;  %v1026_v61 = vmul.f32 %v4237_v0, %v994_v19  ;;  %v998_v0 = vunpack.c.l.bf16 %v4105_v48 }
 0x585   : >> { %v2831_v17 = vpop.f32.mrb[0].mxu1 }
 0x586   : >> { %v1099_v58 = vadd.f32 1e-06, %v2831_v17  ;;  %v1090_v12 = vpop.f32.mrb[1].mxu1 }
 0x587   : >> { %v1091_v32 = vadd.f32 1e-06, %v1090_v12  ;;  %v2832_v63 = vpop.f32.mrb[2].mxu1  ;;  %v1024_v12 = vmul.f32 %v6288_v41, %v992_v38 }
 0x588   : >> { %3589 = vrcp.f32 %v1099_v58  ;;  %v1102_v16 = vadd.f32 1e-06, %v2832_v63  ;;  %v1093_v51 = vpop.f32.mrb[3].mxu1 }
 0x589   : >> { %3591 = vrcp.f32 %v1091_v32  ;;  %v1094_v30 = vadd.f32 1e-06, %v1093_v51 }
 0x58a   : >> { %3593 = vrcp.f32 %v1102_v16  ;;  %v1027_v16 = vmul.f32 %v4233_v15, %v995_v18  ;;  %v999_v15 = vunpack.c.h.bf16 %v4105_v48 }
 0x58b   : >> { %3595 = vrcp.f32 %v1094_v30 }
 0x58c   : >> { %v1031_v33 = vmul.f32 %v4217_v46, %v999_v15  ;;  %v1003_v15 = vunpack.c.h.bf16 %v4097_v53 }
 0x58d   : >> { %v2835_v9 = vpop.f32.mrb[4].mxu1 }
 0x58e   : >> { %v1115_v47 = vadd.f32 1e-06, %v2835_v9  ;;  %v1106_v56 = vpop.f32.mrb[5].mxu1 }
 0x58f   : >> { %v1107_v17 = vadd.f32 1e-06, %v1106_v56  ;;  %v2836_v58 = vpop.f32.mrb[6].mxu1 }
 0x590   : >> { %3597 = vrcp.f32 %v1115_v47  ;;  %v1118_v32 = vadd.f32 1e-06, %v2836_v58  ;;  %v1109_v63 = vpop.f32.mrb[7].mxu1 }
 0x591   : >> { %3599 = vrcp.f32 %v1107_v17  ;;  %v1110_v51 = vadd.f32 1e-06, %v1109_v63 }
 0x592   : >> { %v3590_v30 = vpop.eup %3589  ;;  %3601 = vrcp.f32 %v1118_v32 }
 0x593   : >> { %v3592_v9 = vpop.eup %3591  ;;  %3603 = vrcp.f32 %v1110_v51  ;;  %v5399_v19 = vmul.f32 %v3590_v30, %v1026_v61   ;;  %v1030_v61 = vmul.f32 %v4221_v21, %v998_v0  ;;  %v1029_v21 = vmul.f32 %v4225_v43, %v997_v20 }
 0x594   : >> { %v3594_v41 = vpop.eup %3593  ;;  %v5401_v38 = vmul.f32 %v3592_v9, %v1024_v12   ;;  %v1000_v0 = vunpack.c.l.bf16 %v4101_v59  ;;  %v1001_v43 = vunpack.c.h.bf16 %v4101_v59  ;;  %v1035_v59 = vmul.f32 %v4201_v11, %v1003_v15 }
 0x595   : >> { %6293 = vst [vmem:[#allocation43_spill] sm:$0xff] %v5399_v19  ;;  %v3596_v47 = vpop.eup %3595  ;;  %v2839_v18 = vpop.f32.mrb[8].mxu1  ;;  %v5404_v56 = vmul.f32 %v3594_v41, %v1027_v16   ;;  %v1007_v15 = vunpack.c.h.bf16 %v4089_v14 }
 0x596   : >> { %6294 = vst [vmem:[#allocation41_spill] sm:$0xff] %v5401_v38  ;;  %v1131_v17 = vadd.f32 1e-06, %v2839_v18  ;;  %v1122_v58 = vpop.f32.mrb[9].mxu1  ;;  %v5408_v32 = vmul.f32 %v3596_v47, %v1025_v40   ;;  %v1002_v18 = vunpack.c.l.bf16 %v4097_v53  ;;  %v1032_v20 = vmul.f32 %v4213_v35, %v1000_v0 }
 0x597   : >> { %6295 = vst [vmem:[#allocation39_spill] sm:$0xff] %v5404_v56  ;;  %v1123_v51 = vadd.f32 1e-06, %v1122_v58  ;;  %v2840_v30 = vpop.f32.mrb[10].mxu1  ;;  %v5413_v12 = vpack.c.bf16 %v5404_v56, %v5399_v19 }
 0x598   : >> { %6296 = vst [vmem:[#allocation42_spill] sm:$0xff] %v5408_v32  ;;  %v6297_v63 = vmov %v5408_v32  ;;  %3605 = vrcp.f32 %v1131_v17  ;;  %v1134_v48 = vadd.f32 1e-06, %v2840_v30  ;;  %v1125_v16 = vpop.f32.mrb[11].mxu1 }
 0x599   : >> { %6298 = vst [vmem:[#allocation40_spill] sm:$0xff] %v5413_v12  ;;  %v6299_v9 = vmov %v5413_v12  ;;  %v5417_v2 = vpack.c.bf16 %v6297_v63, %v5401_v38  ;;  %3607 = vrcp.f32 %v1123_v51  ;;  %v1126_v40 = vadd.f32 1e-06, %v1125_v16 }
 0x59a   : >> { %v3598_v8 = vpop.eup %3597  ;;  %3609 = vrcp.f32 %v1134_v48 }
 0x59b   : >> { %6300 = vst [vmem:[#allocation37_spill] sm:$0xff] %v5417_v2  ;;  %v6301_v41 = vmov %v5417_v2  ;;  %v3600_v47 = vpop.eup %3599  ;;  %3611 = vrcp.f32 %v1126_v40  ;;  %v5424_v17 = vmul.f32 %v3598_v8, %v1030_v61   ;;  %v1034_v8 = vmul.f32 %v4205_v31, %v1002_v18 }
 0x59c   : >> { %1338 = vxpose.xlu1.c.b16.start [1/8] %v6301_v41, 128  ;;  %v3602_v58 = vpop.eup %3601  ;;  %v5426_v32 = vmul.f32 %v3600_v47, %v1028_v34   ;;  %v1033_v31 = vmul.f32 %v4209_v44, %v1001_v43  ;;  %v1004_v18 = vunpack.c.l.bf16 %v4093_v29  ;;  %v1005_v44 = vunpack.c.h.bf16 %v4093_v29 }
 0x59d   : >> { %6302 = vst [vmem:[#allocation35_spill] sm:$0xff] %v5424_v17  ;;  %v3604_v46 = vpop.eup %3603  ;;  %v2843_v51 = vpop.f32.mrb[12].mxu1  ;;  %v5429_v12 = vmul.f32 %v3602_v58, %v1031_v33   ;;  %v1039_v29 = vmul.f32 %v4185_v39, %v1007_v15  ;;  %v1011_v15 = vunpack.c.h.bf16 %v4081_v10 }
 0x59e   : >> { %6303 = vst [vmem:[#allocation38_spill] sm:$0xff] %v5426_v32  ;;  %v6304_v30 = vmov %v5426_v32  ;;  %v1147_v48 = vadd.f32 1e-06, %v2843_v51  ;;  %v1138_v2 = vpop.f32.mrb[13].mxu1  ;;  %v5434_v40 = vmul.f32 %v3604_v46, %v1029_v21   ;;  %v1006_v46 = vunpack.c.l.bf16 %v4089_v14 }
 0x59f   : >> { %6305 = vst [vmem:[#allocation36_spill] sm:$0xff] %v5429_v12  ;;  %v6306_v16 = vmov %v5429_v12  ;;  %v1139_v34 = vadd.f32 1e-06, %v1138_v2  ;;  %v2844_v47 = vpop.f32.mrb[14].mxu1  ;;  %v1036_v43 = vmul.f32 %v4197_v27, %v1004_v18 }
 0x5a0   : >> { %1339 = vxpose.xlu1.c.b16.cont [2/8] %v6299_v9, 128  ;;  %6307 = vst [vmem:[#allocation33_spill] sm:$0xff] %v5434_v40  ;;  %v6308_v61 = vmov %v5434_v40  ;;  %v5439_v53 = vpack.c.bf16 %v6306_v16, %v5424_v17  ;;  %3613 = vrcp.f32 %v1147_v48  ;;  %v1150_v33 = vadd.f32 1e-06, %v2844_v47  ;;  %v1141_v58 = vpop.f32.mrb[15].mxu1 }
 0x5a1   : >> { %v5443_v35 = vpack.c.bf16 %v6308_v61, %v6304_v30  ;;  %3615 = vrcp.f32 %v1139_v34  ;;  %v1142_v21 = vadd.f32 1e-06, %v1141_v58 }
 0x5a2   : >> { %6309 = vst [vmem:[#allocation31_spill] sm:$0xff] %v5439_v53  ;;  %v6310_v38 = vmov %v5439_v53  ;;  %v3606_v0 = vpop.eup %3605  ;;  %3617 = vrcp.f32 %v1150_v33 }
 0x5a3   : >> { %6311 = vst [vmem:[#allocation34_spill] sm:$0xff] %v5443_v35  ;;  %v6312_v51 = vmov %v5443_v35  ;;  %v3608_v32 = vpop.eup %3607  ;;  %3619 = vrcp.f32 %v1142_v21  ;;  %v5450_v12 = vmul.f32 %v3606_v0, %v1034_v8   ;;  %v1038_v8 = vmul.f32 %v4189_v50, %v1006_v46 }
 0x5a4   : >> { %1340 = vxpose.xlu1.c.b16.cont [3/8] %v6312_v51, 128  ;;  %v3610_v48 = vpop.eup %3609  ;;  %v5452_v35 = vmul.f32 %v3608_v32, %v1032_v20   ;;  %v1037_v50 = vmul.f32 %v4193_v42, %v1005_v44  ;;  %v1008_v32 = vunpack.c.l.bf16 %v4085_v13  ;;  %v1009_v42 = vunpack.c.h.bf16 %v4085_v13 }
 0x5a5   : >> { %6313 = vst [vmem:[#allocation32_spill] sm:$0xff] %v5450_v12  ;;  %v6314_v47 = vmov %v5450_v12  ;;  %v3612_v11 = vpop.eup %3611  ;;  %v2847_v2 = vpop.f32.mrb[16].mxu1  ;;  %v5455_v40 = vmul.f32 %v3610_v48, %v1035_v59   ;;  %v1010_v12 = vunpack.c.l.bf16 %v4081_v10  ;;  %v1043_v13 = vmul.f32 %v4169_v52, %v1011_v15 }
 0x5a6   : >> { %6315 = vst [vmem:[#allocation13_spill] sm:$0xff] %v5452_v35  ;;  %v6316_v63 = vmov %v5452_v35  ;;  %v1163_v53 = vadd.f32 1e-06, %v2847_v2  ;;  %v1154_v33 = vpop.f32.mrb[17].mxu1  ;;  %v5460_v58 = vmul.f32 %v3612_v11, %v1033_v31   ;;  %v1040_v44 = vmul.f32 %v4181_v57, %v1008_v32 }
 0x5a7   : >> { %6317 = vst [vmem:[#allocation12_spill] sm:$0xff] %v5455_v40  ;;  %v6318_v34 = vmov %v5455_v40  ;;  %v1155_v20 = vadd.f32 1e-06, %v1154_v33  ;;  %v2848_v35 = vpop.f32.mrb[18].mxu1 }
 0x5a8   : >> { %1341 = vxpose.xlu1.c.b16.cont [4/8] %v6310_v38, 128  ;;  %6319 = vst [vmem:[#allocation47_spill] sm:$0xff] %v5460_v58  ;;  %v5465_v14 = vpack.c.bf16 %v6318_v34, %v6314_v47  ;;  %3621 = vrcp.f32 %v1163_v53  ;;  %v1166_v59 = vadd.f32 1e-06, %v2848_v35  ;;  %v1157_v21 = vpop.f32.mrb[19].mxu1  ;;  %v5469_v27 = vpack.c.bf16 %v5460_v58, %v6316_v63 }
 0x5a9   : >> { %3623 = vrcp.f32 %v1155_v20  ;;  %v1158_v0 = vadd.f32 1e-06, %v1157_v21 }
 0x5aa   : >> { %6320 = vst [vmem:[#allocation48_spill] sm:$0xff] %v5465_v14  ;;  %v6321_v19 = vmov %v5465_v14  ;;  %6322 = vst [vmem:[#allocation49_spill] sm:$0xff] %v5469_v27  ;;  %v6323_v18 = vmov %v5469_v27  ;;  %v3614_v31 = vpop.eup %3613  ;;  %3625 = vrcp.f32 %v1166_v59 }
 0x5ab   : >> { %v3616_v46 = vpop.eup %3615  ;;  %3627 = vrcp.f32 %v1158_v0  ;;  %v5476_v48 = vmul.f32 %v3614_v31, %v1038_v8   ;;  %v1042_v8 = vmul.f32 %v4173_v45, %v1010_v12  ;;  %v1041_v45 = vmul.f32 %v4177_v55, %v1009_v42 }
 0x5ac   : >> { %1342 = vxpose.xlu1.c.b16.cont [5/8] %v6323_v18, 128  ;;  %v3618_v11 = vpop.eup %3617  ;;  %v5478_v27 = vmul.f32 %v3616_v46, %v1036_v43   ;;  %v1014_v31 = vunpack.c.l.bf16 %v4073_v5  ;;  %v1015_v46 = vunpack.c.h.bf16 %v4073_v5  ;;  %v1013_v55 = vunpack.c.h.bf16 %v4077_v1 }
 0x5ad   : >> { %6324 = vst [vmem:[#allocation50_spill] sm:$0xff] %v5476_v48  ;;  %v6325_v56 = vmov %v5476_v48  ;;  %v3620_v39 = vpop.eup %3619  ;;  %v2851_v2 = vpop.f32.mrb[20].mxu1  ;;  %v5481_v40 = vmul.f32 %v3618_v11, %v1039_v29   ;;  %v1012_v29 = vunpack.c.l.bf16 %v4077_v1 }
 0x5ae   : >> { %6326 = vst [vmem:[#allocation51_spill] sm:$0xff] %v5478_v27  ;;  %v6327_v30 = vmov %v5478_v27  ;;  %v1179_v53 = vadd.f32 1e-06, %v2851_v2  ;;  %v1170_v33 = vpop.f32.mrb[21].mxu1  ;;  %v5486_v20 = vmul.f32 %v3620_v39, %v1037_v50   ;;  %v1047_v1 = vmul.f32 %v4153_v60, %v1015_v46 }
 0x5af   : >> { %6328 = vst [vmem:[#allocation52_spill] sm:$0xff] %v5481_v40  ;;  %v6329_v61 = vmov %v5481_v40  ;;  %v1171_v43 = vadd.f32 1e-06, %v1170_v33  ;;  %v2852_v35 = vpop.f32.mrb[22].mxu1  ;;  %v1044_v11 = vmul.f32 %v4165_v62, %v1012_v29  ;;  %v1046_v40 = vmul.f32 %v4157_v22, %v1014_v31 }
 0x5b0   : >> { %1343 = vxpose.xlu1.c.b16.cont [6/8] %v6321_v19, 128  ;;  %6330 = vst [vmem:[#allocation53_spill] sm:$0xff] %v5486_v20  ;;  %v6331_v17 = vmov %v5486_v20  ;;  %v5491_v10 = vpack.c.bf16 %v6329_v61, %v6325_v56  ;;  %3629 = vrcp.f32 %v1179_v53  ;;  %v1182_v14 = vadd.f32 1e-06, %v2852_v35  ;;  %v1173_v59 = vpop.f32.mrb[23].mxu1 }
 0x5b1   : >> { %v5495_v57 = vpack.c.bf16 %v6331_v17, %v6327_v30  ;;  %3631 = vrcp.f32 %v1171_v43  ;;  %v1174_v21 = vadd.f32 1e-06, %v1173_v59  ;;  %v1045_v22 = vmul.f32 %v4161_v3, %v1013_v55 }
 0x5b2   : >> { %6332 = vst [vmem:[#allocation54_spill] sm:$0xff] %v5491_v10  ;;  %v6333_v16 = vmov %v5491_v10  ;;  %v3622_v27 = vpop.eup %3621  ;;  %3633 = vrcp.f32 %v1182_v14  ;;  %v1016_v35 = vunpack.c.l.bf16 %v4069_v4  ;;  %v1018_v10 = vunpack.c.l.bf16 %v4065_v28 }
 0x5b3   : >> { %6334 = vst [vmem:[#allocation55_spill] sm:$0xff] %v5495_v57  ;;  %v6335_v63 = vmov %v5495_v57  ;;  %v3624_v0 = vpop.eup %3623  ;;  %3635 = vrcp.f32 %v1174_v21  ;;  %v5502_v50 = vmul.f32 %v3622_v27, %v1042_v8   ;;  %v1019_v59 = vunpack.c.h.bf16 %v4065_v28 }
 0x5b4   : >> { %1344 = vxpose.xlu1.c.b16.cont [7/8] %v6335_v63, 128  ;;  %v3626_v32 = vpop.eup %3625  ;;  %v5504_v57 = vmul.f32 %v3624_v0, %v1040_v44   ;;  %v1050_v29 = vmul.f32 %v4141_v54, %v1018_v10 }
 0x5b5   : >> { %6336 = vst [vmem:[#allocation56_spill] sm:$0xff] %v5502_v50  ;;  %v6337_v58 = vmov %v5502_v50  ;;  %v3628_v52 = vpop.eup %3627  ;;  %v2855_v12 = vpop.f32.mrb[24].mxu1  ;;  %v5507_v48 = vmul.f32 %v3626_v32, %v1043_v13   ;;  %v1017_v13 = vunpack.c.h.bf16 %v4069_v4 }
 0x5b6   : >> { %6338 = vst [vmem:[#allocation57_spill] sm:$0xff] %v5504_v57  ;;  %v6339_v47 = vmov %v5504_v57  ;;  %v1195_v39 = vadd.f32 1e-06, %v2855_v12  ;;  %v1186_v15 = vpop.f32.mrb[25].mxu1  ;;  %v5512_v2 = vmul.f32 %v3628_v52, %v1041_v45   ;;  %v1048_v45 = vmul.f32 %v4149_v37, %v1016_v35 }
 0x5b7   : >> { %6340 = vst [vmem:[#allocation58_spill] sm:$0xff] %v5507_v48  ;;  %v6341_v34 = vmov %v5507_v48  ;;  %v1187_v42 = vadd.f32 1e-06, %v1186_v15  ;;  %v2856_v44 = vpop.f32.mrb[26].mxu1  ;;  %v1051_v52 = vmul.f32 %v4137_v23, %v1019_v59  ;;  %v1049_v46 = vmul.f32 %v4145_v26, %v1017_v13 }
 0x5b8   : >> { %1345 = vxpose.xlu1.c.b16.end [8/8] %v6333_v16, 128  ;;  %6342 = vst [vmem:[#allocation59_spill] sm:$0xff] %v5512_v2  ;;  %v6343_v30 = vmov %v5512_v2  ;;  %v5517_v5 = vpack.c.bf16 %v6341_v34, %v6337_v58  ;;  %3637 = vrcp.f32 %v1195_v39  ;;  %v1198_v53 = vadd.f32 1e-06, %v2856_v44  ;;  %v1189_v33 = vpop.f32.mrb[27].mxu1 }
 0x5b9   : >> { %v5521_v62 = vpack.c.bf16 %v6343_v30, %v6339_v47  ;;  %3639 = vrcp.f32 %v1187_v42  ;;  %v1190_v20 = vadd.f32 1e-06, %v1189_v33  ;;  %v1022_v48 = vunpack.c.l.bf16 %v4057_v7 }
 0x5ba   : >> { %6344 = vst [vmem:[#allocation60_spill] sm:$0xff] %v5517_v5  ;;  %v6345_v17 = vmov %v5517_v5  ;;  %v3630_v8 = vpop.eup %3629  ;;  %3641 = vrcp.f32 %v1198_v53  ;;  %v1020_v23 = vunpack.c.l.bf16 %v4061_v36  ;;  %v1021_v15 = vunpack.c.h.bf16 %v4061_v36 }
 0x5bb   : >> { %6346 = vst [vmem:[#allocation61_spill] sm:$0xff] %v5521_v62  ;;  %v6347_v56 = vmov %v5521_v62  ;;  %v3632_v43 = vpop.eup %3631  ;;  %3643 = vrcp.f32 %v1190_v20  ;;  %v5530_v14 = vmul.f32 %v3630_v8, %v1046_v40   ;;  %v1054_v2 = vmul.f32 %v4125_v25, %v1022_v48  ;;  %v6387_v8 = vld [vmem:[#allocation34_spill] sm:$0xff] }
 0x5bc   : >> { %1354 = vxpose.xlu0.c.b16.start [1/8] %v6347_v56, 128  ;;  %2598 = vmatprep.subr.bf16.mxu0 %v6347_v56  ;;  %v3634_v60 = vpop.eup %3633  ;;  %v5533_v62 = vmul.f32 %v3632_v43, %v1044_v11   ;;  %v1023_v11 = vunpack.c.h.bf16 %v4057_v7  ;;  %v1052_v42 = vmul.f32 %v4133_v49, %v1020_v23  ;;  %v1053_v5 = vmul.f32 %v4129_v6, %v1021_v15  ;;  %v6389_v43 = vld [vmem:[#allocation49_spill] sm:$0xff] }
 0x5bd   : >> { %2599 = vmatpush3.bf16.msra.mxu0 %v6301_v41  ;;  %6348 = vst [vmem:[#allocation62_spill] sm:$0xff] %v5530_v14  ;;  %v6349_v61 = vmov %v5530_v14  ;;  %v3636_v3 = vpop.eup %3635  ;;  %v2859_v57 = vpop.f32.mrb[28].mxu1  ;;  %v5536_v60 = vmul.f32 %v3634_v60, %v1047_v1  }
 0x5be   : >> { %2600 = vmatprep.subr.bf16.mxu0 %v6345_v17  ;;  %6350 = vst [vmem:[#allocation63_spill] sm:$0xff] %v5533_v62  ;;  %v6351_v47 = vmov %v5533_v62  ;;  %v1211_v21 = vadd.f32 1e-06, %v2859_v57  ;;  %v1202_v27 = vpop.f32.mrb[29].mxu1  ;;  %v5540_v3 = vmul.f32 %v3636_v3, %v1045_v22   ;;  %v1055_v36 = vmul.f32 %v4121_v24, %v1023_v11 }
 0x5bf   : >> { %6352 = vst [vmem:[#allocation64_spill] sm:$0xff] %v5536_v60  ;;  %v6353_v30 = vmov %v5536_v60  ;;  %v1203_v0 = vadd.f32 1e-06, %v1202_v27  ;;  %v2860_v31 = vpop.f32.mrb[30].mxu1 }
 0x5c0   : >> { %1355 = vxpose.xlu0.c.b16.cont [2/8] %v6345_v17, 128  ;;  %6354 = vst [vmem:[#allocation65_spill] sm:$0xff] %v5540_v3  ;;  %v6355_v58 = vmov %v5540_v3  ;;  %v5547_v28 = vpack.c.bf16 %v6353_v30, %v6349_v61  ;;  %3645 = vrcp.f32 %v1211_v21  ;;  %v1214_v4 = vadd.f32 1e-06, %v2860_v31  ;;  %v1205_v50 = vpop.f32.mrb[31].mxu1 }
 0x5c1   : >> { %2601 = vmatpush3.bf16.msra.mxu0 %v6299_v9  ;;  %v5551_v32 = vpack.c.bf16 %v6355_v58, %v6351_v47  ;;  %3647 = vrcp.f32 %v1203_v0  ;;  %v1206_v37 = vadd.f32 1e-06, %v1205_v50  ;;  %v6390_v50 = vld [vmem:[#allocation15_spill] sm:$0xff] }
 0x5c2   : >> { %6356 = vst [vmem:[#allocation66_spill] sm:$0xff] %v5547_v28  ;;  %v6357_v34 = vmov %v5547_v28  ;;  %v3638_v54 = vpop.eup %3637  ;;  %3649 = vrcp.f32 %v1214_v4 }
 0x5c3   : >> { %6358 = vst [vmem:[#allocation67_spill] sm:$0xff] %v5551_v32  ;;  %v6359_v17 = vmov %v5551_v32  ;;  %v3640_v12 = vpop.eup %3639  ;;  %3651 = vrcp.f32 %v1206_v37  ;;  %v5559_v54 = vmul.f32 %v3638_v54, %v1050_v29  }
 0x5c4   : >> { %1356 = vxpose.xlu0.c.b16.cont [3/8] %v6359_v17, 128  ;;  %2602 = vmatprep.subr.bf16.mxu0 %v6359_v17  ;;  %v3642_v55 = vpop.eup %3641  ;;  %v5563_v37 = vmul.f32 %v3640_v12, %v1048_v45  }
 0x5c5   : >> { %2603 = vmatpush3.bf16.msra.mxu0 %v6312_v51  ;;  %6360 = vst [vmem:[#allocation68_spill] sm:$0xff] %v5559_v54  ;;  %v6361_v47 = vmov %v5559_v54  ;;  %v3644_v26 = vpop.eup %3643  ;;  %v5566_v39 = vmul.f32 %v3642_v55, %v1051_v52  }
 0x5c6   : >> { %2604 = vmatprep.subr.bf16.mxu0 %v6357_v34  ;;  %6362 = vst [vmem:[#allocation69_spill] sm:$0xff] %v5563_v37  ;;  %v6363_v58 = vmov %v5563_v37  ;;  %v5570_v26 = vmul.f32 %v3644_v26, %v1049_v46  }
 0x5c7   : >> { %6364 = vst [vmem:[#allocation70_spill] sm:$0xff] %v5566_v39  ;;  %v6365_v61 = vmov %v5566_v39 }
 0x5c8   : >> { %1357 = vxpose.xlu0.c.b16.cont [4/8] %v6357_v34, 128  ;;  %6366 = vst [vmem:[#allocation71_spill] sm:$0xff] %v5570_v26  ;;  %v6367_v30 = vmov %v5570_v26  ;;  %v5576_v40 = vpack.c.bf16 %v6365_v61, %v6361_v47 }
 0x5c9   : >> { %2605 = vmatpush3.bf16.msra.mxu0 %v6310_v38  ;;  %v5581_v7 = vpack.c.bf16 %v6367_v30, %v6363_v58 }
 0x5ca   : >> { %6368 = vst [vmem:[#allocation72_spill] sm:$0xff] %v5576_v40  ;;  %v6369_v51 = vmov %v5576_v40  ;;  %v3646_v44 = vpop.eup %3645 }
 0x5cb   : >> { %6370 = vst [vmem:[#allocation73_spill] sm:$0xff] %v5581_v7  ;;  %v6371_v17 = vmov %v5581_v7  ;;  %v3648_v25 = vpop.eup %3647  ;;  %v5588_v53 = vmul.f32 %v3646_v44, %v1054_v2   ;;  %v6388_v22 = vmov %v5581_v7 }
 0x5cc   : >> { %1358 = vxpose.xlu0.c.b16.cont [5/8] %v6371_v17, 128  ;;  %2606 = vmatprep.subr.bf16.mxu0 %v6371_v17  ;;  %v3650_v33 = vpop.eup %3649  ;;  %v5591_v49 = vmul.f32 %v3648_v25, %v1052_v42  }
 0x5cd   : >> { %2607 = vmatpush3.bf16.msra.mxu0 %v6323_v18  ;;  %6372 = vst [vmem:[#allocation74_spill] sm:$0xff] %v5588_v53  ;;  %v6373_v47 = vmov %v5588_v53  ;;  %v3652_v62 = vpop.eup %3651  ;;  %v5593_v24 = vmul.f32 %v3650_v33, %v1055_v36  }
 0x5ce   : >> { %2608 = vmatprep.subr.bf16.mxu0 %v6369_v51  ;;  %6374 = vst [vmem:[#allocation75_spill] sm:$0xff] %v5591_v49  ;;  %v6375_v58 = vmov %v5591_v49  ;;  %v5596_v6 = vmul.f32 %v3652_v62, %v1053_v5   ;;  %v6384_v49 = vld [vmem:[#allocation11_spill] sm:$0xff] }
 0x5cf   : >> { %6376 = vst [vmem:[#allocation76_spill] sm:$0xff] %v5593_v24  ;;  %v6377_v30 = vmov %v5593_v24  ;;  %v6386_v24 = vmov %v5551_v32  ;;  %v4263_v32 = vmov 0.0  }
 0x5d0   : >> { %1359 = vxpose.xlu0.c.b16.cont [6/8] %v6369_v51, 128  ;;  %6378 = vst [vmem:[#allocation77_spill] sm:$0xff] %v5596_v6  ;;  %v6379_v61 = vmov %v5596_v6  ;;  %v5601_v1 = vpack.c.bf16 %v6377_v30, %v6373_v47  ;;  %v6385_v6 = vld [vmem:[#allocation60_spill] sm:$0xff]  ;;  %2861 = vmatprep.subr.bf16.mxu1 %v4263_v32 }
 0x5d1   : >> { %2609 = vmatpush3.bf16.msra.mxu0 %v6321_v19  ;;  %v5605_v20 = vpack.c.bf16 %v6379_v61, %v6375_v58  ;;  %2877 = vmatprep.mubr.msk.bf16.mxu1 %vm4264_vm2, %v4263_v32 }
 0x5d2   : >> { %6380 = vst [vmem:[#allocation78_spill] sm:$0xff] %v5601_v1  ;;  %v6381_v18 = vmov %v5601_v1 }
 0x5d3   : >> { %6382 = vst [vmem:[#allocation79_spill] sm:$0xff] %v5605_v20  ;;  %v6383_v17 = vmov %v5605_v20 }
 0x5d4   : >> { %1360 = vxpose.xlu0.c.b16.cont [7/8] %v6383_v17, 128  ;;  %2610 = vmatprep.subr.bf16.mxu0 %v6383_v17 }
 0x5d5   : >> { %2611 = vmatpush3.bf16.msra.mxu0 %v6335_v63 }
 0x5d6   : >> { %2612 = vmatprep.subr.bf16.mxu0 %v6381_v18 }
 0x5d8   : >> { %1361 = vxpose.xlu0.c.b16.end [8/8] %v6381_v18, 128 }
 0x5d9   : >> { %2613 = vmatpush3.bf16.msra.mxu0 %v6333_v16 }
 0x5da   : >> { %2620 = vmatprep.subr.bf16.mxu0 %v6347_v56 }
 0x5dc   : >> { %1330 = vmatmul.mubr.bf16.vlgmr.msra.gmra.mrb[16].mxu0 %v6384_v49 }
 0x5dd   : >> { %2621 = vmatpush3.bf16.msra.mxu0 %v6301_v41 }
 0x5de   : >> { %2622 = vmatprep.subr.bf16.mxu0 %v6385_v6 }
 0x5e1   : >> { %2623 = vmatpush3.bf16.msra.mxu0 %v6299_v9 }
 0x5e2   : >> { %2624 = vmatprep.subr.bf16.mxu0 %v6386_v24 }
 0x5e5   : >> { %2625 = vmatpush3.bf16.msra.mxu0 %v6387_v8 }
 0x5e6   : >> { %2626 = vmatprep.subr.bf16.mxu0 %v6357_v34 }
 0x5e9   : >> { %2627 = vmatpush3.bf16.msra.mxu0 %v6310_v38 }
 0x5ea   : >> { %2628 = vmatprep.subr.bf16.mxu0 %v6388_v22 }
 0x5ed   : >> { %2629 = vmatpush3.bf16.msra.mxu0 %v6389_v43 }
 0x5ee   : >> { %2630 = vmatprep.subr.bf16.mxu0 %v6369_v51 }
 0x5f1   : >> { %2631 = vmatpush3.bf16.msra.mxu0 %v6321_v19 }
 0x5f2   : >> { %2632 = vmatprep.subr.bf16.mxu0 %v6383_v17 }
 0x5f5   : >> { %2633 = vmatpush3.bf16.msra.mxu0 %v6335_v63 }
 0x5f6   : >> { %2634 = vmatprep.subr.bf16.mxu0 %v6381_v18 }
 0x5f9   : >> { %2635 = vmatpush3.bf16.msra.mxu0 %v6333_v16 }
 0x602   : >> { %v1346_v35 = vpop.trf.xlu1 }
 0x606   : >> { %v1347_v60 = vpop.trf.xlu1 }
 0x60a   : >> { %v1348_v59 = vpop.trf.xlu1 }
 0x60e   : >> { %v1349_v13 = vpop.trf.xlu1 }
 0x612   : >> { %v1350_v27 = vpop.trf.xlu1 }
 0x616   : >> { %v1351_v29 = vpop.trf.xlu1 }
 0x61a   : >> { %v1352_v31 = vpop.trf.xlu1 }
 0x61e   : >> { %v1353_v4 = vpop.trf.xlu1 }
 0x622   : >> { %v1362_v10 = vpop.trf.xlu0 }
 0x623   : >> { %1402 = vmatprep.mubr.bf16.mxu0 %v1362_v10 }
 0x624   : >> { %1403 = vmatmul.mubr.bf16.vlgmr.msra.gmra.mrb[20].mxu0 %v1346_v35 }
 0x626   : >> { %v1363_v14 = vpop.trf.xlu0 }
 0x627   : >> { %1410 = vmatprep.mubr.bf16.mxu0 %v1363_v14 }
 0x62a   : >> { %v1364_v3 = vpop.trf.xlu0 }
 0x62c   : >> { %1411 = vmatmul.mubr.bf16.gmra.mrb[24].mxu0 %v1347_v60 }
 0x62d   : >> { %1418 = vmatprep.mubr.bf16.mxu0 %v1364_v3 }
 0x62e   : >> { %v1365_v57 = vpop.trf.xlu0 }
 0x632   : >> { %v1366_v21 = vpop.trf.xlu0 }
 0x634   : >> { %1419 = vmatmul.mubr.bf16.gmra.mrb[28].mxu0 %v1348_v59 }
 0x635   : >> { %1426 = vmatprep.mubr.bf16.mxu0 %v1365_v57 }
 0x636   : >> { %v1367_v45 = vpop.trf.xlu0 }
 0x63a   : >> { %v1368_v0 = vpop.trf.xlu0 }
 0x63c   : >> { %1427 = vmatmul.mubr.bf16.gmra.mrb[32].mxu0 %v1349_v13 }
 0x63d   : >> { %1434 = vmatprep.mubr.bf16.mxu0 %v1366_v21 }
 0x63e   : >> { %v1369_v28 = vpop.trf.xlu0 }
 0x644   : >> { %1435 = vmatmul.mubr.bf16.gmra.mrb[36].mxu0 %v1350_v27 }
 0x645   : >> { %1442 = vmatprep.mubr.bf16.mxu0 %v1367_v45 }
 0x64c   : >> { %1443 = vmatmul.mubr.bf16.gmra.mrb[40].mxu0 %v1351_v29 }
 0x64d   : >> { %1450 = vmatprep.mubr.bf16.mxu0 %v1368_v0 }
 0x654   : >> { %1451 = vmatmul.mubr.bf16.gmra.mrb[44].mxu0 %v1352_v31 }
 0x655   : >> { %1458 = vmatprep.mubr.bf16.mxu0 %v1369_v28 }
 0x65c   : >> { %1459 = vmatmul.mubr.bf16.gmra.mrb[48].mxu0 %v1353_v4 }
 0x65d   : >> { %2883 = vmatprep.mubr.msk.bf16.mxu0 %vm225_vm0, %v6390_v50 }
 0x6af   : >> { %v2614_v52 = vpop.f32.mrb[16].mxu0 }
 0x6b0   : >> { %v2615_v37 = vpop.f32.mrb[17].mxu0 }
 0x6b1   : >> { %v5633_v54 = vadd.f32 %v2615_v37, %v2614_v52  ;;  %v2617_v46 = vpop.f32.mrb[18].mxu0 }
 0x6b2   : >> { %v2618_v12 = vpop.f32.mrb[19].mxu0 }
 0x6b3   : >> { %v5635_v48 = vadd.f32 %v2618_v12, %v2617_v46 }
 0x6f7   : >> { %v2636_v55 = vpop.f32.mrb[20].mxu0 }
 0x6f8   : >> { %v2637_v23 = vpop.f32.mrb[21].mxu0 }
 0x6f9   : >> { %v2638_v26 = vadd.f32 %v2637_v23, %v2636_v55  ;;  %v2639_v11 = vpop.f32.mrb[22].mxu0 }
 0x6fa   : >> { %v2640_v39 = vpop.f32.mrb[23].mxu0 }
 0x6fb   : >> { %v2641_v15 = vadd.f32 %v2640_v39, %v2639_v11 }
 0x6fd   : >> { %v1467_v2 = vpack.c.bf16 %v2641_v15, %v2638_v26 }
 0x6ff   : >> { %v2642_v40 = vpop.f32.mrb[24].mxu0  ;;  %2862 = vmatpush3.bf16.msra.mxu1 %v1467_v2 }
 0x700   : >> { %v2643_v42 = vpop.f32.mrb[25].mxu0  ;;  %2863 = vmatprep.subr.bf16.mxu1 %v4263_v32 }
 0x701   : >> { %v2644_v7 = vadd.f32 %v2643_v42, %v2642_v40  ;;  %v2645_v36 = vpop.f32.mrb[26].mxu0 }
 0x702   : >> { %v2646_v44 = vpop.f32.mrb[27].mxu0 }
 0x703   : >> { %v2647_v5 = vadd.f32 %v2646_v44, %v2645_v36  ;;  %v6391_v36 = vld [vmem:[#allocation46_spill] sm:$0xff]  ;;  %v6392_v44 = vld [vmem:[#allocation19_spill] sm:$0xff] }
 0x705   : >> { %v1468_v25 = vpack.c.bf16 %v2647_v5, %v2644_v7 }
 0x707   : >> { %v2648_v53 = vpop.f32.mrb[28].mxu0  ;;  %2864 = vmatpush3.bf16.msra.mxu1 %v1468_v25 }
 0x708   : >> { %v2649_v33 = vpop.f32.mrb[29].mxu0  ;;  %2865 = vmatprep.subr.bf16.mxu1 %v4263_v32 }
 0x709   : >> { %v2650_v62 = vadd.f32 %v2649_v33, %v2648_v53  ;;  %v2651_v1 = vpop.f32.mrb[30].mxu0 }
 0x70a   : >> { %v2652_v20 = vpop.f32.mrb[31].mxu0 }
 0x70b   : >> { %v2653_v49 = vadd.f32 %v2652_v20, %v2651_v1 }
 0x70d   : >> { %v1469_v6 = vpack.c.bf16 %v2653_v49, %v2650_v62 }
 0x70f   : >> { %v2654_v24 = vpop.f32.mrb[32].mxu0  ;;  %2866 = vmatpush3.bf16.msra.mxu1 %v1469_v6  ;;  %v6394_v6 = vld [vmem:[#allocation44_spill] sm:$0xff] }
 0x710   : >> { %v2655_v8 = vpop.f32.mrb[33].mxu0  ;;  %2867 = vmatprep.subr.bf16.mxu1 %v4263_v32 }
 0x711   : >> { %v2656_v22 = vadd.f32 %v2655_v8, %v2654_v24  ;;  %v2657_v43 = vpop.f32.mrb[34].mxu0  ;;  %v1476_v24 = vmul.f32 %v6394_v6, %v5635_v48  ;;  %v6398_v48 = vld [vmem:[#allocation16_spill] sm:$0xff] }
 0x712   : >> { %v2658_v35 = vpop.f32.mrb[35].mxu0 }
 0x713   : >> { %v2659_v10 = vadd.f32 %v2658_v35, %v2657_v43  ;;  %v6399_v43 = vld [vmem:[#allocation21_spill] sm:$0xff] }
 0x714   : >> { %v6400_v35 = vld [vmem:[#allocation17_spill] sm:$0xff] }
 0x715   : >> { %v1470_v14 = vpack.c.bf16 %v2659_v10, %v2656_v22  ;;  %v6401_v10 = vld [vmem:[#allocation22_spill] sm:$0xff] }
 0x717   : >> { %v2660_v60 = vpop.f32.mrb[36].mxu0  ;;  %2868 = vmatpush3.bf16.msra.mxu1 %v1470_v14  ;;  %v6402_v14 = vld [vmem:[#allocation18_spill] sm:$0xff] }
 0x718   : >> { %v2661_v3 = vpop.f32.mrb[37].mxu0  ;;  %2869 = vmatprep.subr.bf16.mxu1 %v4263_v32 }
 0x719   : >> { %v2662_v59 = vadd.f32 %v2661_v3, %v2660_v60  ;;  %v2663_v57 = vpop.f32.mrb[38].mxu0  ;;  %v6403_v60 = vld [vmem:[#allocation23_spill] sm:$0xff]  ;;  %v6404_v3 = vld [vmem:[#allocation24_spill] sm:$0xff] }
 0x71a   : >> { %v2664_v13 = vpop.f32.mrb[39].mxu0 }
 0x71b   : >> { %v2665_v21 = vadd.f32 %v2664_v13, %v2663_v57  ;;  %v6406_v57 = vld [vmem:[#allocation26_spill] sm:$0xff]  ;;  %v6407_v13 = vld [vmem:[#allocation27_spill] sm:$0xff] }
 0x71d   : >> { %v1471_v27 = vpack.c.bf16 %v2665_v21, %v2662_v59  ;;  %v6405_v59 = vld [vmem:[#allocation25_spill] sm:$0xff]  ;;  %v6408_v21 = vld [vmem:[#allocation28_spill] sm:$0xff] }
 0x71f   : >> { %v2666_v45 = vpop.f32.mrb[40].mxu0  ;;  %2870 = vmatpush3.bf16.msra.mxu1 %v1471_v27  ;;  %v6409_v27 = vld [vmem:[#allocation29_spill] sm:$0xff] }
 0x720   : >> { %v2667_v29 = vpop.f32.mrb[41].mxu0  ;;  %2871 = vmatprep.subr.bf16.mxu1 %v4263_v32 }
 0x721   : >> { %v2668_v0 = vadd.f32 %v2667_v29, %v2666_v45  ;;  %v2669_v31 = vpop.f32.mrb[42].mxu0  ;;  %v6410_v45 = vld [vmem:[#allocation30_spill] sm:$0xff] }
 0x722   : >> { %v2670_v28 = vpop.f32.mrb[43].mxu0 }
 0x723   : >> { %v2671_v4 = vadd.f32 %v2670_v28, %v2669_v31 }
 0x725   : >> { %v1472_v50 = vpack.c.bf16 %v2671_v4, %v2668_v0 }
 0x727   : >> { %v2672_v52 = vpop.f32.mrb[44].mxu0  ;;  %2872 = vmatpush3.bf16.msra.mxu1 %v1472_v50 }
 0x728   : >> { %v2673_v37 = vpop.f32.mrb[45].mxu0  ;;  %2873 = vmatprep.subr.bf16.mxu1 %v4263_v32 }
 0x729   : >> { %v2674_v46 = vadd.f32 %v2673_v37, %v2672_v52  ;;  %v2675_v12 = vpop.f32.mrb[46].mxu0 }
 0x72a   : >> { %v2676_v55 = vpop.f32.mrb[47].mxu0 }
 0x72b   : >> { %v2677_v23 = vadd.f32 %v2676_v55, %v2675_v12 }
 0x72d   : >> { %v1473_v26 = vpack.c.bf16 %v2677_v23, %v2674_v46 }
 0x72f   : >> { %v2678_v11 = vpop.f32.mrb[48].mxu0  ;;  %2874 = vmatpush3.bf16.msra.mxu1 %v1473_v26 }
 0x730   : >> { %v2679_v39 = vpop.f32.mrb[49].mxu0  ;;  %2875 = vmatprep.subr.bf16.mxu1 %v4263_v32  ;;  %v6393_v32 = vld [vmem:[#allocation45_spill] sm:$0xff] }
 0x731   : >> { %v2680_v15 = vadd.f32 %v2679_v39, %v2678_v11  ;;  %v2681_v2 = vpop.f32.mrb[50].mxu0  ;;  %v1475_v20 = vmul.f32 %v6393_v32, %v5633_v54  ;;  %v6397_v54 = vld [vmem:[#allocation20_spill] sm:$0xff] }
 0x732   : >> { %v2682_v40 = vpop.f32.mrb[51].mxu0 }
 0x733   : >> { %v2683_v42 = vadd.f32 %v2682_v40, %v2681_v2 }
 0x735   : >> { %v1474_v7 = vpack.c.bf16 %v2683_v42, %v2680_v15 }
 0x737   : >> { %2876 = vmatpush3.bf16.msra.mxu1 %v1474_v7 }
 0x73a   : >> { %2878 = vmatmul.mubr.bf16.vlgmr.msra.gmra.mrb[32].mxu1 %v6391_v36 }
 0x73b   : >> { %2891 = vmatprep.mubr.msk.bf16.mxu1 %vm225_vm0, %v6392_v44 }
 0x80d   : >> { %v1511_v5 = vpop.f32.mrb[32].mxu1 }
 0x80e   : >> { %v1512_v25 = vadd.f32 1e-06, %v1511_v5  ;;  %v2879_v53 = vpop.f32.mrb[33].mxu1 }
 0x80f   : >> { %v1514_v33 = vpop.f32.mrb[34].mxu1 }
 0x810   : >> { %3653 = vrcp.f32 %v1512_v25  ;;  %v1515_v62 = vadd.f32 1e-06, %v1514_v33  ;;  %v2880_v1 = vpop.f32.mrb[35].mxu1 }
 0x812   : >> { %3655 = vrcp.f32 %v1515_v62 }
 0x81a   : >> { %v3654_v49 = vpop.eup %3653 }
 0x81b   : >> { %v5652_v32 = vmul.f32 %v3654_v49, %v1475_v20  }
 0x81c   : >> { %v3656_v8 = vpop.eup %3655 }
 0x81d   : >> { %v5654_v12 = vmul.f32 %v3656_v8, %v1476_v24  }
 0x81f   : >> { %v5658_v22 = vpack.c.bf16 %v5654_v12, %v5652_v32 }
 0x821   : >> { %6395 = vst [vmem:[#allocation80_spill] sm:$0xff] %v5658_v22  ;;  %v6396_v18 = vmov %v5658_v22 }
 0x822   : >> { %2881 = vmatprep.subr.bf16.mxu0 %v6396_v18  ;;  %2983 = vmatprep.subr.bf16.mxu1 %v6396_v18 }
 0x823   : >> { %2882 = vmatpush3.bf16.msra.mxu0 %v6396_v18  ;;  %2984 = vmatpush3.bf16.msra.mxu1 %v6396_v18 }
 0x826   : >> { %2892 = vmatmul.mubr.msk.bf16.vlgmr.msra.gmra.mrb[36].mxu1 %vm225_vm0, %v6397_v54  ;;  %2884 = vmatmul.mubr.msk.bf16.vlgmr.msra.gmra.mrb[52].mxu0 %vm225_vm0, %v6398_v48 }
 0x827   : >> { %2895 = vmatprep.mubr.msk.bf16.mxu1 %vm225_vm0, %v6399_v43  ;;  %2887 = vmatprep.mubr.msk.bf16.mxu0 %vm225_vm0, %v6400_v35  ;;  %v6477_v35 = vld [vmem:[#allocation13_spill] sm:$0xff] }
 0x828   : >> { %v6480_v43 = vld [vmem:[#allocation33_spill] sm:$0xff] }
 0x82e   : >> { %2896 = vmatmul.mubr.msk.bf16.gmra.mrb[40].mxu1 %vm225_vm0, %v6401_v10  ;;  %2888 = vmatmul.mubr.msk.bf16.gmra.mrb[56].mxu0 %vm225_vm0, %v6402_v14 }
 0x82f   : >> { %2899 = vmatprep.mubr.msk.bf16.mxu1 %vm225_vm0, %v6403_v60  ;;  %v6462_v60 = vld [vmem:[#allocation64_spill] sm:$0xff] }
 0x836   : >> { %2900 = vmatmul.mubr.msk.bf16.gmra.mrb[44].mxu1 %vm225_vm0, %v6404_v3  ;;  %v6464_v3 = vld [vmem:[#allocation65_spill] sm:$0xff] }
 0x837   : >> { %2903 = vmatprep.mubr.msk.bf16.mxu1 %vm225_vm0, %v6405_v59 }
 0x83e   : >> { %2904 = vmatmul.mubr.msk.bf16.gmra.mrb[48].mxu1 %vm225_vm0, %v6406_v57  ;;  %v6469_v57 = vld [vmem:[#allocation57_spill] sm:$0xff] }
 0x83f   : >> { %2907 = vmatprep.mubr.msk.bf16.mxu1 %vm225_vm0, %v6407_v13 }
 0x846   : >> { %2908 = vmatmul.mubr.msk.bf16.gmra.mrb[52].mxu1 %vm225_vm0, %v6408_v21  ;;  %v6479_v21 = vld [vmem:[#allocation35_spill] sm:$0xff] }
 0x847   : >> { %2911 = vmatprep.mubr.msk.bf16.mxu1 %vm225_vm0, %v6409_v27  ;;  %v6473_v27 = vld [vmem:[#allocation51_spill] sm:$0xff] }
 0x84e   : >> { %2912 = vmatmul.mubr.msk.bf16.gmra.mrb[56].mxu1 %vm225_vm0, %v6410_v45  ;;  %v6467_v45 = vld [vmem:[#allocation56_spill] sm:$0xff] }
 0x8f9   : >> { %v2893_v29 = vpop.f32.mrb[36].mxu1  ;;  %v2885_v0 = vpop.f32.mrb[52].mxu0 }
 0x8fa   : >> { %v1589_v31 = vpop.f32.mrb[37].mxu1  ;;  %v1557_v28 = vpop.f32.mrb[53].mxu0 }
 0x8fb   : >> { %v2894_v4 = vpop.f32.mrb[38].mxu1  ;;  %v2886_v50 = vpop.f32.mrb[54].mxu0 }
 0x8fc   : >> { %v5692_v53 = vpack.c.bf16 %v2894_v4, %v2893_v29   ;;  %v1592_v52 = vpop.f32.mrb[39].mxu1  ;;  %v5694_v40 = vpack.c.bf16 %v2886_v50, %v2885_v0   ;;  %v1560_v37 = vpop.f32.mrb[55].mxu0  ;;  %v6471_v50 = vld [vmem:[#allocation50_spill] sm:$0xff]  ;;  %v6483_v0 = vld [vmem:[#allocation43_spill] sm:$0xff] }
 0x8fd   : >> { %v5696_v59 = vpack.c.bf16 %v1592_v52, %v1589_v31   ;;  %v5698_v8 = vpack.c.bf16 %v1560_v37, %v1557_v28   ;;  %v6461_v37 = vld [vmem:[#allocation69_spill] sm:$0xff]  ;;  %v6466_v52 = vld [vmem:[#allocation58_spill] sm:$0xff] }
 0x8fe   : >> { %v6411_v17 = vmov %v5692_v53  ;;  %v6412_v51 = vmov %v5694_v40  ;;  %v6475_v31 = vld [vmem:[#allocation32_spill] sm:$0xff] }
 0x8ff   : >> { %v6413_v34 = vmov %v5696_v59  ;;  %6414 = vst [vmem:[#allocation81_spill] sm:$0xff] %v5698_v8 }
 0x900   : >> { %v6449_v59 = vmov %v6413_v34 }
 0x901   : >> { %v2897_v46 = vpop.f32.mrb[40].mxu1  ;;  %v2889_v55 = vpop.f32.mrb[56].mxu0 }
 0x902   : >> { %v1605_v23 = vpop.f32.mrb[41].mxu1  ;;  %v1573_v26 = vpop.f32.mrb[57].mxu0 }
 0x903   : >> { %v2898_v11 = vpop.f32.mrb[42].mxu1  ;;  %v2890_v39 = vpop.f32.mrb[58].mxu0 }
 0x904   : >> { %v5700_v14 = vpack.c.bf16 %v2898_v11, %v2897_v46   ;;  %v1608_v15 = vpop.f32.mrb[43].mxu1  ;;  %v5702_v48 = vpack.c.bf16 %v2890_v39, %v2889_v55   ;;  %v1576_v2 = vpop.f32.mrb[59].mxu0  ;;  %v6468_v55 = vld [vmem:[#allocation59_spill] sm:$0xff]  ;;  %v6470_v39 = vld [vmem:[#allocation52_spill] sm:$0xff]  ;;  %v6474_v11 = vld [vmem:[#allocation12_spill] sm:$0xff] }
 0x905   : >> { %v5704_v29 = vpack.c.bf16 %v1608_v15, %v1605_v23   ;;  %v5706_v2 = vpack.c.bf16 %v1576_v2, %v1573_v26   ;;  %v6458_v23 = vld [vmem:[#allocation70_spill] sm:$0xff]  ;;  %v6460_v26 = vld [vmem:[#allocation71_spill] sm:$0xff]  ;;  %v6482_v15 = vld [vmem:[#allocation39_spill] sm:$0xff] }
 0x906   : >> { %v6415_v16 = vmov %v5700_v14  ;;  %v6416_v63 = vmov %v5702_v48  ;;  %v6478_v46 = vld [vmem:[#allocation36_spill] sm:$0xff]  ;;  %v6491_v26 = vld [vmem:[#allocation34_spill] sm:$0xff] (%p5727_p4)  ;;  %v6492_v11 = vld [vmem:[#allocation31_spill] sm:$0xff] (%p5727_p4) }
 0x907   : >> { %v6417_v19 = vmov %v5704_v29  ;;  %v6418_v38 = vmov %v5706_v2  ;;  %v6446_v14 = vmov %v6415_v16  ;;  %v6450_v48 = vmov %v6416_v63  ;;  %v6490_v23 = vld [vmem:[#allocation40_spill] sm:$0xff] (%p5727_p4)  ;;  %v6493_v39 = vld [vmem:[#allocation49_spill] sm:$0xff] (%p5727_p4)  ;;  %v6494_v15 = vld [vmem:[#allocation48_spill] sm:$0xff] (%p5727_p4) }
 0x908   : >> { %v6447_v29 = vmov %v6417_v19  ;;  %v6451_v2 = vmov %v6418_v38 }
 0x909   : >> { %v2901_v40 = vpop.f32.mrb[44].mxu1  ;;  %v6495_v2 = vld [vmem:[#allocation55_spill] sm:$0xff] (%p5727_p4) }
 0x90a   : >> { %v1621_v42 = vpop.f32.mrb[45].mxu1 }
 0x90b   : >> { %v2902_v7 = vpop.f32.mrb[46].mxu1 }
 0x90c   : >> { %v5708_v10 = vpack.c.bf16 %v2902_v7, %v2901_v40   ;;  %v1624_v36 = vpop.f32.mrb[47].mxu1  ;;  %v6452_v40 = vmov %v6412_v51 }
 0x90d   : >> { %v5710_v13 = vpack.c.bf16 %v1624_v36, %v1621_v42   ;;  %v6472_v42 = vld [vmem:[#allocation53_spill] sm:$0xff]  ;;  %v6496_v40 = vld [vmem:[#allocation54_spill] sm:$0xff] (%p5727_p4) }
 0x90e   : >> { %v6419_v9 = vmov %v5708_v10  ;;  %v6497_v42 = vld [vmem:[#allocation61_spill] sm:$0xff] (%p5727_p4) }
 0x90f   : >> { %v6420_v41 = vmov %v5710_v13  ;;  %v6444_v10 = vmov %v6419_v9 }
 0x910   : >> { %v6445_v13 = vmov %v6420_v41 }
 0x911   : >> { %v2905_v44 = vpop.f32.mrb[48].mxu1 }
 0x912   : >> { %v1637_v5 = vpop.f32.mrb[49].mxu1 }
 0x913   : >> { %v2906_v25 = vpop.f32.mrb[50].mxu1 }
 0x914   : >> { %v5712_v53 = vpack.c.bf16 %v2906_v25, %v2905_v44   ;;  %v1640_v33 = vpop.f32.mrb[51].mxu1  ;;  %v6455_v25 = vld [vmem:[#allocation74_spill] sm:$0xff]  ;;  %v6476_v44 = vld [vmem:[#allocation47_spill] sm:$0xff] }
 0x915   : >> { %v5714_v1 = vpack.c.bf16 %v1640_v33, %v1637_v5   ;;  %v6481_v33 = vld [vmem:[#allocation38_spill] sm:$0xff]  ;;  %v6500_v44 = vld [vmem:[#allocation66_spill] sm:$0xff] (%p5727_p4) }
 0x916   : >> { %v6421_v18 = vmov %v5712_v53  ;;  %v6448_v53 = vmov %v6411_v17  ;;  %v6502_v25 = vld [vmem:[#allocation72_spill] sm:$0xff] (%p5727_p4)  ;;  %v6504_v33 = vld [vmem:[#allocation78_spill] sm:$0xff] (%p5727_p4) }
 0x917   : >> { %6422 = vst [vmem:[#allocation82_spill] sm:$0xff] %v5714_v1  ;;  %v6441_v5 = vmov %v6421_v18  ;;  %v6442_v58 = vmov %v5714_v1  ;;  %v6503_v53 = vld [vmem:[#allocation79_spill] sm:$0xff] (%p5727_p4) }
 0x918   : >> { %v6443_v1 = vmov %v6442_v58  ;;  %v6501_v5 = vld [vmem:[#allocation73_spill] sm:$0xff] (%p5727_p4) }
 0x919   : >> { %v2909_v62 = vpop.f32.mrb[52].mxu1 }
 0x91a   : >> { %v1653_v20 = vpop.f32.mrb[53].mxu1 }
 0x91b   : >> { %v2910_v49 = vpop.f32.mrb[54].mxu1 }
 0x91c   : >> { %v5716_v28 = vpack.c.bf16 %v2910_v49, %v2909_v62   ;;  %v1656_v6 = vpop.f32.mrb[55].mxu1  ;;  %v6457_v49 = vld [vmem:[#allocation75_spill] sm:$0xff] }
 0x91d   : >> { %v5718_v4 = vpack.c.bf16 %v1656_v6, %v1653_v20   ;;  %v6456_v6 = vld [vmem:[#allocation77_spill] sm:$0xff]  ;;  %v6465_v62 = vld [vmem:[#allocation63_spill] sm:$0xff]  ;;  %v6484_v20 = vld [vmem:[#allocation42_spill] sm:$0xff] }
 0x91e   : >> { %6424 = vst [vmem:[#allocation83_spill] sm:$0xff] %v5716_v28  ;;  %v6437_v61 = vmov %v5716_v28 }
 0x91f   : >> { %6426 = vst [vmem:[#allocation84_spill] sm:$0xff] %v5718_v4  ;;  %v6438_v28 = vmov %v6437_v61  ;;  %v6439_v47 = vmov %v5718_v4 }
 0x920   : >> { %v6440_v4 = vmov %v6439_v47  ;;  %v6489_v47 = vld [vmem:[#allocation37_spill] sm:$0xff] (%p5727_p4) }
 0x921   : >> { %v2913_v24 = vpop.f32.mrb[56].mxu1  ;;  %2949 = vmatprep.mubr.bf16.mxu1 (%p5727_p4), %v6489_v47 }
 0x922   : >> { %v1669_v8 = vpop.f32.mrb[57].mxu1 }
 0x923   : >> { %v2914_v22 = vpop.f32.mrb[58].mxu1  ;;  %778 = sbr.rel (!%p5727_p4) target bundleno = 844 (0x34c), region = 84 }
 0x924   : >> { %v5720_v7 = vpack.c.bf16 %v2914_v22, %v2913_v24   ;;  %v1672_v54 = vpop.f32.mrb[59].mxu1  ;;  %v6454_v24 = vld [vmem:[#allocation76_spill] sm:$0xff]  ;;  %v6463_v22 = vld [vmem:[#allocation62_spill] sm:$0xff] }
 0x925   : >> { %v5722_v36 = vpack.c.bf16 %v1672_v54, %v1669_v8   ;;  %v6453_v8 = vld [vmem:[#allocation81_spill] sm:$0xff]  ;;  %v6459_v54 = vld [vmem:[#allocation68_spill] sm:$0xff] }
 0x926   : >> { %6428 = vst [vmem:[#allocation85_spill] sm:$0xff] %v5720_v7  ;;  %v6433_v30 = vmov %v5720_v7 }
 0x927   : >> { %6430 = vst [vmem:[#allocation86_spill] sm:$0xff] %v5722_v36  ;;  %v6434_v7 = vmov %v6433_v30  ;;  %v6435_v56 = vmov %v5722_v36  ;;  %v6488_v30 = vld [vmem:[#allocation80_spill] sm:$0xff] (%p5727_p4) }
 0x928   : >> { %v6436_v36 = vmov %v6435_v56  ;;  %v6485_v56 = vld [vmem:[#allocation41_spill] sm:$0xff]  ;;  %1701 = vxpose.xlu0.c.b16.start.end [1/1] (short) (%p5727_p4), %v6488_v30, 128  ;;  %2915 = vmatprep.subr.bf16.mxu0 (%p5727_p4), %v6488_v30  ;;  %v6498_v7 = vld [vmem:[#allocation60_spill] sm:$0xff] (%p5727_p4) }
 0x929   : >> { %6486 = vst [vmem:[#allocation44_spill] sm:$0xff] %v6485_v56  ;;  %2916 = vmatpush3.bf16.msra.mxu0 (%p5727_p4), %v6488_v30  ;;  %v6499_v36 = vld [vmem:[#allocation67_spill] sm:$0xff] (%p5727_p4) }
 0x98e   : > { %v1709_v56 = vpop.trf.xlu0 }
 0x98f   : > { %2917 = vmatprep.mubr.msk.bf16.mxu0 %vm225_vm0, %v1709_v56 }
 0x992   : > { %v1710_v61 = vpop.trf.xlu0 }
 0x993   : > { %2918 = vmatmul.mubr.msk.bf16.vlgmr.msra.gmra.mrb[0].mxu0 %vm225_vm0, %v1710_v61 }
 0x996   : > { %v1711_v32 = vpop.trf.xlu0 }
 0x997   : > { %2921 = vmatprep.mubr.msk.bf16.mxu0 %vm225_vm0, %v1711_v32  ;;  %v1864_v32 = vunpack.c.l.bf16 %v6412_v51 }
 0x99a   : > { %v1712_v58 = vpop.trf.xlu0 }
 0x99b   : > { %2922 = vmatmul.mubr.msk.bf16.gmra.mrb[4].mxu0 %vm225_vm0, %v1712_v58 }
 0x99e   : > { %v1713_v12 = vpop.trf.xlu0 }
 0x99f   : > { %2925 = vmatprep.mubr.msk.bf16.mxu0 %vm225_vm0, %v1713_v12  ;;  %v1865_v12 = vunpack.c.h.bf16 %v6412_v51  ;;  %v6508_v51 = vld [vmem:[#allocation41_spill] sm:$0xff] }
 0x9a2   : > { %v1714_v1 = vpop.trf.xlu0 }
 0x9a3   : > { %2926 = vmatmul.mubr.msk.bf16.gmra.mrb[8].mxu0 %vm225_vm0, %v1714_v1 }
 0x9a6   : > { %v1715_v48 = vpop.trf.xlu0 }
 0x9a7   : > { %2929 = vmatprep.mubr.msk.bf16.mxu0 %vm225_vm0, %v1715_v48 }
 0x9aa   : > { %v1716_v47 = vpop.trf.xlu0 }
 0x9ab   : > { %2930 = vmatmul.mubr.msk.bf16.gmra.mrb[12].mxu0 %vm225_vm0, %v1716_v47  ;;  %v6505_v47 = vld [vmem:[#allocation81_spill] sm:$0xff] }
 0x9ac   : > { %2759 = vmatprep.mubr.bf16.mxu0 %v6488_v30 }
 0xa66   : > { %v2919_v61 = vpop.f32.mrb[0].mxu0 }
 0xa67   : > { %v1775_v43 = vpop.f32.mrb[1].mxu0 }
 0xa68   : > { %v2920_v35 = vpop.f32.mrb[2].mxu0 }
 0xa69   : > { %v1855_v10 = vpack.c.bf16 %v2920_v35, %v2919_v61  ;;  %v1778_v14 = vpop.f32.mrb[3].mxu0  ;;  %v1862_v61 = vunpack.c.l.bf16 %v6505_v47 }
 0xa6a   : > { %v1854_v58 = vpack.c.bf16 %v1778_v14, %v1775_v43  ;;  %v1863_v43 = vunpack.c.h.bf16 %v6505_v47 }
 0xa6c   : > { %2933 = vmatprep.subr.bf16.mxu1 %v1854_v58 }
 0xa6d   : > { %2934 = vmatpush3.bf16.msra.mxu1 %v1854_v58 }
 0xa6e   : > { %v2923_v60 = vpop.f32.mrb[4].mxu0  ;;  %2935 = vmatprep.subr.bf16.mxu1 %v1855_v10 }
 0xa6f   : > { %v1791_v3 = vpop.f32.mrb[5].mxu0 }
 0xa70   : > { %v2924_v59 = vpop.f32.mrb[6].mxu0 }
 0xa71   : > { %v1857_v57 = vpack.c.bf16 %v2924_v59, %v2923_v60  ;;  %v1794_v13 = vpop.f32.mrb[7].mxu0  ;;  %2936 = vmatpush3.bf16.msra.mxu1 %v1855_v10 }
 0xa72   : > { %v1856_v21 = vpack.c.bf16 %v1794_v13, %v1791_v3  ;;  %v6506_v3 = vld [vmem:[#allocation43_spill] sm:$0xff] }
 0xa73   : > { %v1896_v59 = vmul.f32 %v1864_v32, %v6506_v3 }
 0xa74   : > { %2937 = vmatprep.subr.bf16.mxu1 %v1856_v21 }
 0xa75   : > { %2938 = vmatpush3.bf16.msra.mxu1 %v1856_v21 }
 0xa76   : > { %v2927_v27 = vpop.f32.mrb[8].mxu0  ;;  %2939 = vmatprep.subr.bf16.mxu1 %v1857_v57 }
 0xa77   : > { %v1807_v45 = vpop.f32.mrb[9].mxu0 }
 0xa78   : > { %v2928_v29 = vpop.f32.mrb[10].mxu0 }
 0xa79   : > { %v1859_v0 = vpack.c.bf16 %v2928_v29, %v2927_v27  ;;  %v1810_v31 = vpop.f32.mrb[11].mxu0  ;;  %2940 = vmatpush3.bf16.msra.mxu1 %v1857_v57  ;;  %v6507_v57 = vld [vmem:[#allocation39_spill] sm:$0xff]  ;;  %v1894_v27 = vmul.f32 %v1862_v61, %v6508_v51  ;;  %v6515_v51 = vld [vmem:[#allocation12_spill] sm:$0xff] }
 0xa7a   : > { %v1858_v28 = vpack.c.bf16 %v1810_v31, %v1807_v45  ;;  %v1897_v13 = vmul.f32 %v1865_v12, %v6507_v57  ;;  %v6509_v45 = vld [vmem:[#allocation42_spill] sm:$0xff] }
 0xa7b   : > { %v1895_v29 = vmul.f32 %v1863_v43, %v6509_v45 }
 0xa7c   : > { %2941 = vmatprep.subr.bf16.mxu1 %v1858_v28 }
 0xa7d   : > { %2942 = vmatpush3.bf16.msra.mxu1 %v1858_v28  ;;  %v1868_v28 = vunpack.c.l.bf16 %v6416_v63 }
 0xa7e   : > { %v2931_v4 = vpop.f32.mrb[12].mxu0  ;;  %2943 = vmatprep.subr.bf16.mxu1 %v1859_v0 }
 0xa7f   : > { %v1823_v50 = vpop.f32.mrb[13].mxu0 }
 0xa80   : > { %v2932_v52 = vpop.f32.mrb[14].mxu0 }
 0xa81   : > { %v1861_v37 = vpack.c.bf16 %v2932_v52, %v2931_v4  ;;  %v1826_v46 = vpop.f32.mrb[15].mxu0  ;;  %2944 = vmatpush3.bf16.msra.mxu1 %v1859_v0 }
 0xa82   : > { %v1860_v55 = vpack.c.bf16 %v1826_v46, %v1823_v50  ;;  %v1866_v46 = vunpack.c.l.bf16 %v6418_v38 }
 0xa84   : > { %2945 = vmatprep.subr.bf16.mxu1 %v1860_v55 }
 0xa85   : > { %2946 = vmatpush3.bf16.msra.mxu1 %v1860_v55  ;;  %v1869_v55 = vunpack.c.h.bf16 %v6416_v63 }
 0xa86   : > { %2947 = vmatprep.subr.bf16.mxu1 %v1861_v37 }
 0xa89   : > { %2948 = vmatpush3.bf16.msra.mxu1 %v1861_v37 }
 0xa8c   : > { %2950 = vmatmul.mubr.bf16.vlgmr.msra.gmra.mrb[0].mxu1 %v6490_v23 }
 0xa8d   : > { %2953 = vmatprep.mubr.bf16.mxu1 %v6491_v26 }
 0xa94   : > { %2954 = vmatmul.mubr.bf16.gmra.mrb[4].mxu1 %v6492_v11 }
 0xa95   : > { %2957 = vmatprep.mubr.bf16.mxu1 %v6493_v39 }
 0xa9c   : > { %2958 = vmatmul.mubr.bf16.gmra.mrb[8].mxu1 %v6494_v15  ;;  %v1867_v15 = vunpack.c.h.bf16 %v6418_v38  ;;  %v6512_v38 = vld [vmem:[#allocation38_spill] sm:$0xff] }
 0xa9d   : > { %2961 = vmatprep.mubr.bf16.mxu1 %v6495_v2 }
 0xaa4   : > { %2962 = vmatmul.mubr.bf16.gmra.mrb[12].mxu1 %v6496_v40 }
 0xaa5   : > { %2965 = vmatprep.mubr.bf16.mxu1 %v6497_v42 }
 0xaac   : > { %2966 = vmatmul.mubr.bf16.gmra.mrb[16].mxu1 %v6498_v7 }
 0xaad   : > { %2969 = vmatprep.mubr.bf16.mxu1 %v6499_v36 }
 0xab4   : > { %2970 = vmatmul.mubr.bf16.gmra.mrb[20].mxu1 %v6500_v44 }
 0xab5   : > { %2973 = vmatprep.mubr.bf16.mxu1 %v6501_v5  ;;  %v6510_v5 = vld [vmem:[#allocation35_spill] sm:$0xff] }
 0xabc   : > { %2974 = vmatmul.mubr.bf16.gmra.mrb[24].mxu1 %v6502_v25  ;;  %v1900_v25 = vmul.f32 %v1868_v28, %v6510_v5  ;;  %v1875_v5 = vunpack.c.h.bf16 %v6417_v19 }
 0xabd   : > { %2977 = vmatprep.mubr.bf16.mxu1 %v6503_v53  ;;  %v6511_v53 = vld [vmem:[#allocation36_spill] sm:$0xff] }
 0xac4   : > { %2978 = vmatmul.mubr.bf16.gmra.mrb[28].mxu1 %v6504_v33  ;;  %v1901_v33 = vmul.f32 %v1869_v55, %v6511_v53 }
 0xb5f   : > { %v2951_v62 = vpop.f32.mrb[0].mxu1 }
 0xb60   : > { %v1969_v20 = vadd.f32 1e-06, %v2951_v62  ;;  %v1960_v49 = vpop.f32.mrb[1].mxu1 }
 0xb61   : > { %v1961_v6 = vadd.f32 1e-06, %v1960_v49  ;;  %v2952_v24 = vpop.f32.mrb[2].mxu1  ;;  %v6513_v49 = vld [vmem:[#allocation33_spill] sm:$0xff] }
 0xb62   : > { %3657 = vrcp.f32 %v1969_v20  ;;  %v1972_v8 = vadd.f32 1e-06, %v2952_v24  ;;  %v1963_v22 = vpop.f32.mrb[3].mxu1  ;;  %v1898_v20 = vmul.f32 %v1866_v46, %v6512_v38 }
 0xb63   : > { %3659 = vrcp.f32 %v1961_v6  ;;  %v1964_v54 = vadd.f32 1e-06, %v1963_v22  ;;  %v1899_v6 = vmul.f32 %v1867_v15, %v6513_v49  ;;  %v1872_v22 = vunpack.c.l.bf16 %v6411_v17  ;;  %v6518_v49 = vld [vmem:[#allocation50_spill] sm:$0xff] }
 0xb64   : > { %3661 = vrcp.f32 %v1972_v8  ;;  %v1874_v15 = vunpack.c.l.bf16 %v6417_v19  ;;  %v6520_v19 = vld [vmem:[#allocation51_spill] sm:$0xff] }
 0xb65   : > { %3663 = vrcp.f32 %v1964_v54 }
 0xb67   : > { %v2955_v56 = vpop.f32.mrb[4].mxu1 }
 0xb68   : > { %v1985_v1 = vadd.f32 1e-06, %v2955_v56  ;;  %v1976_v48 = vpop.f32.mrb[5].mxu1 }
 0xb69   : > { %v1977_v35 = vadd.f32 1e-06, %v1976_v48  ;;  %v2956_v10 = vpop.f32.mrb[6].mxu1  ;;  %v1873_v48 = vunpack.c.h.bf16 %v6411_v17 }
 0xb6a   : > { %3665 = vrcp.f32 %v1985_v1  ;;  %v1988_v14 = vadd.f32 1e-06, %v2956_v10  ;;  %v1979_v58 = vpop.f32.mrb[7].mxu1  ;;  %v1870_v1 = vunpack.c.l.bf16 %v6413_v34  ;;  %v1871_v10 = vunpack.c.h.bf16 %v6413_v34  ;;  %v6516_v34 = vld [vmem:[#allocation13_spill] sm:$0xff] }
 0xb6b   : > { %3667 = vrcp.f32 %v1977_v35  ;;  %v1980_v60 = vadd.f32 1e-06, %v1979_v58 }
 0xb6c   : > { %v3658_v21 = vpop.eup %3657  ;;  %3669 = vrcp.f32 %v1988_v14 }
 0xb6d   : > { %v3660_v0 = vpop.eup %3659  ;;  %3671 = vrcp.f32 %v1980_v60  ;;  %v5924_v52 = vmul.f32 %v3658_v21, %v1896_v59 }
 0xb6e   : > { %v3662_v31 = vpop.eup %3661  ;;  %v5930_v11 = vmul.f32 %v3660_v0, %v1894_v27  ;;  %v1905_v27 = vmul.f32 %v1873_v48, %v6515_v51  ;;  %v6517_v0 = vld [vmem:[#allocation47_spill] sm:$0xff]  ;;  %v1879_v51 = vunpack.c.h.bf16 %v6420_v41 }
 0xb6f   : > { %v3664_v4 = vpop.eup %3663  ;;  %v2959_v50 = vpop.f32.mrb[8].mxu1  ;;  %v5926_v37 = vmul.f32 %v3662_v31, %v1897_v13  ;;  %v6514_v13 = vld [vmem:[#allocation32_spill] sm:$0xff]  ;;  %v1903_v31 = vmul.f32 %v1871_v10, %v6517_v0 }
 0xb70   : > { %v2001_v23 = vadd.f32 1e-06, %v2959_v50  ;;  %v1992_v26 = vpop.f32.mrb[9].mxu1  ;;  %v5932_v39 = vmul.f32 %v3664_v4, %v1895_v29  ;;  %v1904_v21 = vmul.f32 %v1872_v22, %v6514_v13  ;;  %v1902_v29 = vmul.f32 %v1870_v1, %v6516_v34 }
 0xb71   : > { %v1993_v2 = vadd.f32 1e-06, %v1992_v26  ;;  %v2960_v40 = vpop.f32.mrb[10].mxu1  ;;  %v2152_v42 = vpack.c.bf16 %v5926_v37, %v5924_v52  ;;  %v1876_v50 = vunpack.c.l.bf16 %v6415_v16 }
 0xb72   : > { %3673 = vrcp.f32 %v2001_v23  ;;  %v2004_v7 = vadd.f32 1e-06, %v2960_v40  ;;  %v1995_v36 = vpop.f32.mrb[11].mxu1  ;;  %v2151_v44 = vpack.c.bf16 %v5932_v39, %v5930_v11 }
 0xb73   : > { %3675 = vrcp.f32 %v1993_v2  ;;  %v1996_v63 = vadd.f32 1e-06, %v1995_v36  ;;  %v1877_v2 = vunpack.c.h.bf16 %v6415_v16 }
 0xb74   : > { %v3666_v62 = vpop.eup %3665  ;;  %3677 = vrcp.f32 %v2004_v7 }
 0xb75   : > { %v3668_v24 = vpop.eup %3667  ;;  %3679 = vrcp.f32 %v1996_v63  ;;  %v5944_v32 = vmul.f32 %v3666_v62, %v1900_v25 }
 0xb76   : > { %v3670_v8 = vpop.eup %3669  ;;  %v5950_v43 = vmul.f32 %v3668_v24, %v1898_v20  ;;  %v6519_v24 = vld [vmem:[#allocation52_spill] sm:$0xff] }
 0xb77   : > { %v3672_v54 = vpop.eup %3671  ;;  %v2963_v56 = vpop.f32.mrb[12].mxu1  ;;  %v5946_v12 = vmul.f32 %v3670_v8, %v1901_v33  ;;  %v1909_v8 = vmul.f32 %v1877_v2, %v6519_v24  ;;  %v6524_v2 = vld [vmem:[#allocation57_spill] sm:$0xff] }
 0xb78   : > { %v2017_v47 = vadd.f32 1e-06, %v2963_v56  ;;  %v2008_v61 = vpop.f32.mrb[13].mxu1  ;;  %v5952_v35 = vmul.f32 %v3672_v54, %v1899_v6  ;;  %v1908_v6 = vmul.f32 %v1876_v50, %v6518_v49  ;;  %v1906_v54 = vmul.f32 %v1874_v15, %v6520_v19  ;;  %v6521_v56 = vld [vmem:[#allocation53_spill] sm:$0xff]  ;;  %v6522_v50 = vld [vmem:[#allocation56_spill] sm:$0xff] }
 0xb79   : > { %v2009_v14 = vadd.f32 1e-06, %v2008_v61  ;;  %v2964_v58 = vpop.f32.mrb[14].mxu1  ;;  %v2154_v60 = vpack.c.bf16 %v5946_v12, %v5944_v32  ;;  %v1907_v1 = vmul.f32 %v1875_v5, %v6521_v56  ;;  %v1880_v61 = vunpack.c.l.bf16 %v6419_v9 }
 0xb7a   : > { %3681 = vrcp.f32 %v2017_v47  ;;  %v2020_v3 = vadd.f32 1e-06, %v2964_v58  ;;  %v2011_v59 = vpop.f32.mrb[15].mxu1  ;;  %v2153_v57 = vpack.c.bf16 %v5952_v35, %v5950_v43  ;;  %v1878_v58 = vunpack.c.l.bf16 %v6420_v41  ;;  %v6523_v41 = vld [vmem:[#allocation58_spill] sm:$0xff] }
 0xb7b   : > { %3683 = vrcp.f32 %v2009_v14  ;;  %v2012_v17 = vadd.f32 1e-06, %v2011_v59 }
 0xb7c   : > { %v3674_v45 = vpop.eup %3673  ;;  %3685 = vrcp.f32 %v2020_v3  ;;  %v1881_v3 = vunpack.c.h.bf16 %v6419_v9 }
 0xb7d   : > { %v3676_v28 = vpop.eup %3675  ;;  %3687 = vrcp.f32 %v2012_v17  ;;  %v5964_v23 = vmul.f32 %v3674_v45, %v1904_v21 }
 0xb7e   : > { %v3678_v4 = vpop.eup %3677  ;;  %v5970_v36 = vmul.f32 %v3676_v28, %v1902_v29 }
 0xb7f   : > { %v3680_v46 = vpop.eup %3679  ;;  %v2967_v55 = vpop.f32.mrb[16].mxu1  ;;  %v5966_v26 = vmul.f32 %v3678_v4, %v1905_v27 }
 0xb80   : > { %v2033_v40 = vadd.f32 1e-06, %v2967_v55  ;;  %v2024_v7 = vpop.f32.mrb[17].mxu1  ;;  %v5972_v63 = vmul.f32 %v3680_v46, %v1903_v31  ;;  %v1912_v46 = vmul.f32 %v1880_v61, %v6522_v50  ;;  %v1913_v55 = vmul.f32 %v1881_v3, %v6523_v41 }
 0xb81   : > { %v2025_v25 = vadd.f32 1e-06, %v2024_v7  ;;  %v2968_v53 = vpop.f32.mrb[18].mxu1  ;;  %v2156_v33 = vpack.c.bf16 %v5966_v26, %v5964_v23  ;;  %v6525_v7 = vld [vmem:[#allocation59_spill] sm:$0xff] }
 0xb82   : > { %3689 = vrcp.f32 %v2033_v40  ;;  %v2036_v62 = vadd.f32 1e-06, %v2968_v53  ;;  %v2027_v38 = vpop.f32.mrb[19].mxu1  ;;  %v2155_v20 = vpack.c.bf16 %v5972_v63, %v5970_v36  ;;  %v1910_v40 = vmul.f32 %v1878_v58, %v6524_v2 }
 0xb83   : > { %3691 = vrcp.f32 %v2025_v25  ;;  %v2028_v16 = vadd.f32 1e-06, %v2027_v38  ;;  %v1911_v5 = vmul.f32 %v1879_v51, %v6525_v7  ;;  %v1884_v53 = vunpack.c.l.bf16 %v6421_v18  ;;  %v6526_v38 = vld [vmem:[#allocation82_spill] sm:$0xff]  ;;  %v6528_v51 = vld [vmem:[#allocation63_spill] sm:$0xff]  ;;  %v6532_v7 = vld [vmem:[#allocation84_spill] sm:$0xff] }
 0xb84   : > { %v3682_v22 = vpop.eup %3681  ;;  %3693 = vrcp.f32 %v2036_v62  ;;  %v1887_v11 = vunpack.c.h.bf16 %v6532_v7 }
 0xb85   : > { %v3684_v48 = vpop.eup %3683  ;;  %3695 = vrcp.f32 %v2028_v16  ;;  %v5986_v59 = vmul.f32 %v3682_v22, %v1908_v6  ;;  %v1882_v16 = vunpack.c.l.bf16 %v6526_v38  ;;  %v1885_v22 = vunpack.c.h.bf16 %v6421_v18  ;;  %v6529_v18 = vld [vmem:[#allocation64_spill] sm:$0xff] }
 0xb86   : > { %v3686_v47 = vpop.eup %3685  ;;  %v5991_v27 = vmul.f32 %v3684_v48, %v1906_v54  ;;  %v1883_v48 = vunpack.c.h.bf16 %v6526_v38 }
 0xb87   : > { %v3688_v10 = vpop.eup %3687  ;;  %v2971_v14 = vpop.f32.mrb[20].mxu1  ;;  %v5988_v17 = vmul.f32 %v3686_v47, %v1909_v8 }
 0xb88   : > { %v2049_v13 = vadd.f32 1e-06, %v2971_v14  ;;  %v2040_v21 = vpop.f32.mrb[21].mxu1  ;;  %v5993_v45 = vmul.f32 %v3688_v10, %v1907_v1  ;;  %v6527_v14 = vld [vmem:[#allocation62_spill] sm:$0xff] }
 0xb89   : > { %v2041_v34 = vadd.f32 1e-06, %v2040_v21  ;;  %v2972_v29 = vpop.f32.mrb[22].mxu1  ;;  %v2158_v0 = vpack.c.bf16 %v5988_v17, %v5986_v59  ;;  %v1916_v58 = vmul.f32 %v1884_v53, %v6527_v14 }
 0xb8a   : > { %3697 = vrcp.f32 %v2049_v13  ;;  %v2052_v31 = vadd.f32 1e-06, %v2972_v29  ;;  %v2043_v9 = vpop.f32.mrb[23].mxu1  ;;  %v2157_v28 = vpack.c.bf16 %v5993_v45, %v5991_v27 }
 0xb8b   : > { %3699 = vrcp.f32 %v2041_v34  ;;  %v2044_v4 = vadd.f32 1e-06, %v2043_v9  ;;  %v1914_v34 = vmul.f32 %v1882_v16, %v6528_v51  ;;  %v6537_v51 = vld [vmem:[#allocation85_spill] sm:$0xff] }
 0xb8c   : > { %v3690_v15 = vpop.eup %3689  ;;  %3701 = vrcp.f32 %v2052_v31  ;;  %v1917_v31 = vmul.f32 %v1885_v22, %v6529_v18 }
 0xb8d   : > { %v3692_v25 = vpop.eup %3691  ;;  %3703 = vrcp.f32 %v2044_v4  ;;  %v2137_v6 = vmul.f32 %v3690_v15, %v1912_v46  ;;  %v6530_v4 = vld [vmem:[#allocation65_spill] sm:$0xff] }
 0xb8e   : > { %v3694_v62 = vpop.eup %3693  ;;  %v2135_v19 = vmul.f32 %v3692_v25, %v1910_v40  ;;  %v1915_v50 = vmul.f32 %v1883_v48, %v6530_v4 }
 0xb8f   : > { %v3696_v49 = vpop.eup %3695  ;;  %v2138_v24 = vmul.f32 %v3694_v62, %v1913_v55  ;;  %v2975_v8 = vpop.f32.mrb[24].mxu1  ;;  %v6531_v55 = vld [vmem:[#allocation83_spill] sm:$0xff] }
 0xb90   : > { %v2136_v54 = vmul.f32 %v3696_v49, %v1911_v5  ;;  %v2065_v56 = vadd.f32 1e-06, %v2975_v8  ;;  %v2056_v1 = vpop.f32.mrb[25].mxu1  ;;  %v1888_v15 = vunpack.c.l.bf16 %v6531_v55  ;;  %v1886_v5 = vunpack.c.l.bf16 %v6532_v7  ;;  %v6533_v8 = vld [vmem:[#allocation68_spill] sm:$0xff] }
 0xb91   : > { %v2160_v47 = vpack.c.bf16 %v2138_v24, %v2137_v6  ;;  %v2057_v61 = vadd.f32 1e-06, %v2056_v1  ;;  %v2976_v10 = vpop.f32.mrb[26].mxu1  ;;  %v1889_v38 = vunpack.c.h.bf16 %v6531_v55  ;;  %v6534_v1 = vld [vmem:[#allocation69_spill] sm:$0xff]  ;;  %v6541_v7 = vld [vmem:[#allocation76_spill] sm:$0xff] }
 0xb92   : > { %v2159_v3 = vpack.c.bf16 %v2136_v54, %v2135_v19  ;;  %3705 = vrcp.f32 %v2065_v56  ;;  %v2068_v13 = vadd.f32 1e-06, %v2976_v10  ;;  %v2059_v21 = vpop.f32.mrb[27].mxu1  ;;  %v1920_v22 = vmul.f32 %v1888_v15, %v6533_v8 }
 0xb93   : > { %3707 = vrcp.f32 %v2057_v61  ;;  %v2060_v29 = vadd.f32 1e-06, %v2059_v21  ;;  %v1918_v48 = vmul.f32 %v1886_v5, %v6534_v1  ;;  %v6535_v61 = vld [vmem:[#allocation70_spill] sm:$0xff] }
 0xb94   : > { %v3698_v9 = vpop.eup %3697  ;;  %2743 = vmatprep.subr.bf16.mxu0 %v2159_v3  ;;  %3709 = vrcp.f32 %v2068_v13  ;;  %v1921_v10 = vmul.f32 %v1889_v38, %v6535_v61 }
 0xb95   : > { %v3700_v46 = vpop.eup %3699  ;;  %2744 = vmatpush3.bf16.xpose.msra.mxu0 %v2151_v44  ;;  %3711 = vrcp.f32 %v2060_v29  ;;  %v2141_v41 = vmul.f32 %v3698_v9, %v1916_v58  ;;  %v6536_v58 = vld [vmem:[#allocation71_spill] sm:$0xff] }
 0xb96   : > { %v3702_v2 = vpop.eup %3701  ;;  %2745 = vmatprep.subr.bf16.mxu0 %v2160_v47  ;;  %v2139_v40 = vmul.f32 %v3700_v46, %v1914_v34  ;;  %v1919_v3 = vmul.f32 %v1887_v11, %v6536_v58  ;;  %v1892_v34 = vunpack.c.l.bf16 %v6537_v51  ;;  %v1893_v46 = vunpack.c.h.bf16 %v6537_v51 }
 0xb97   : > { %v3704_v25 = vpop.eup %3703  ;;  %v2142_v53 = vmul.f32 %v3702_v2, %v1917_v31  ;;  %v2979_v62 = vpop.f32.mrb[28].mxu1  ;;  %v6538_v31 = vld [vmem:[#allocation86_spill] sm:$0xff] }
 0xb98   : > { %v2140_v16 = vmul.f32 %v3704_v25, %v1915_v50  ;;  %v2081_v49 = vadd.f32 1e-06, %v2979_v62  ;;  %v2072_v6 = vpop.f32.mrb[29].mxu1  ;;  %v1890_v9 = vunpack.c.l.bf16 %v6538_v31  ;;  %v1891_v55 = vunpack.c.h.bf16 %v6538_v31  ;;  %v6539_v2 = vld [vmem:[#allocation74_spill] sm:$0xff] }
 0xb99   : > { %v2162_v39 = vpack.c.bf16 %v2142_v53, %v2141_v41  ;;  %v2073_v44 = vadd.f32 1e-06, %v2072_v6  ;;  %v2980_v24 = vpop.f32.mrb[30].mxu1  ;;  %v1924_v52 = vmul.f32 %v1892_v34, %v6539_v2  ;;  %v1925_v5 = vmul.f32 %v1893_v46, %v6541_v7  ;;  %v6542_v53 = vld [vmem:[#allocation77_spill] sm:$0xff] }
 0xb9a   : > { %v2161_v19 = vpack.c.bf16 %v2140_v16, %v2139_v40  ;;  %3713 = vrcp.f32 %v2081_v49  ;;  %v2084_v54 = vadd.f32 1e-06, %v2980_v24  ;;  %v2075_v56 = vpop.f32.mrb[31].mxu1  ;;  %v1923_v62 = vmul.f32 %v1891_v55, %v6542_v53 }
 0xb9b   : > { %3715 = vrcp.f32 %v2073_v44  ;;  %v2076_v47 = vadd.f32 1e-06, %v2075_v56 }
 0xb9c   : > { %v3706_v14 = vpop.eup %3705  ;;  %3717 = vrcp.f32 %v2084_v54 }
 0xb9d   : > { %v3708_v13 = vpop.eup %3707  ;;  %2746 = vmatpush3.bf16.xpose.msra.mxu0 %v2152_v42  ;;  %3719 = vrcp.f32 %v2076_v47  ;;  %v2145_v21 = vmul.f32 %v3706_v14, %v1920_v22  ;;  %v6540_v42 = vld [vmem:[#allocation75_spill] sm:$0xff] }
 0xb9e   : > { %v3710_v29 = vpop.eup %3709  ;;  %2747 = vmatprep.subr.bf16.mxu0 %v2161_v19  ;;  %v2143_v18 = vmul.f32 %v3708_v13, %v1918_v48  ;;  %v1922_v40 = vmul.f32 %v1890_v9, %v6540_v42 }
 0xb9f   : > { %v3712_v4 = vpop.eup %3711  ;;  %v2146_v50 = vmul.f32 %v3710_v29, %v1921_v10 }
 0xba0   : > { %v2144_v41 = vmul.f32 %v3712_v4, %v1919_v3 }
 0xba1   : > { %v2164_v15 = vpack.c.bf16 %v2146_v50, %v2145_v21 }
 0xba2   : > { %v2163_v37 = vpack.c.bf16 %v2144_v41, %v2143_v18 }
 0xba4   : > { %v3714_v25 = vpop.eup %3713 }
 0xba5   : > { %v3716_v38 = vpop.eup %3715  ;;  %2748 = vmatpush3.bf16.xpose.msra.mxu0 %v2153_v57  ;;  %v2149_v16 = vmul.f32 %v3714_v25, %v1924_v52 }
 0xba6   : > { %v3718_v49 = vpop.eup %3717  ;;  %2749 = vmatprep.subr.bf16.mxu0 %v2162_v39  ;;  %v2147_v6 = vmul.f32 %v3716_v38, %v1922_v40 }
 0xba7   : > { %v3720_v11 = vpop.eup %3719  ;;  %v2150_v44 = vmul.f32 %v3718_v49, %v1925_v5 }
 0xba8   : > { %v2148_v24 = vmul.f32 %v3720_v11, %v1923_v62 }
 0xba9   : > { %v2166_v8 = vpack.c.bf16 %v2150_v44, %v2149_v16 }
 0xbaa   : > { %v2165_v22 = vpack.c.bf16 %v2148_v24, %v2147_v6 }
 0xbad   : > { %2750 = vmatpush3.bf16.xpose.msra.mxu0 %v2154_v60 }
 0xbae   : > { %2751 = vmatprep.subr.bf16.mxu0 %v2163_v37 }
 0xbb5   : > { %2752 = vmatpush3.bf16.xpose.msra.mxu0 %v2155_v20 }
 0xbb6   : > { %2753 = vmatprep.subr.bf16.mxu0 %v2164_v15 }
 0xbbd   : > { %2754 = vmatpush3.bf16.xpose.msra.mxu0 %v2156_v33 }
 0xbbe   : > { %2755 = vmatprep.subr.bf16.mxu0 %v2165_v22 }
 0xbc5   : > { %2756 = vmatpush3.bf16.xpose.msra.mxu0 %v2157_v28 }
 0xbc6   : > { %2757 = vmatprep.subr.bf16.mxu0 %v2166_v8 }
 0xbcd   : > { %2758 = vmatpush3.bf16.xpose.msra.mxu0 %v2158_v0 }
 0xbd4   : > { %2760 = vmatmul.mubr.bf16.vlgmr.msra.gmra.mrb[16].mxu0 %v6488_v30 }
 0xca7   : > { %v2201_v32 = vpop.f32.mrb[16].mxu0 }
 0xca8   : > { %v2203_v12 = vpop.f32.mrb[17].mxu0 }
 0xca9   : > { %v2545_v43 = vpack.c.bf16 %v2203_v12, %v2201_v32  ;;  %v2205_v35 = vpop.f32.mrb[18].mxu0 }
 0xcaa   : > { %v2207_v60 = vpop.f32.mrb[19].mxu0 }
 0xcab   : > { %2222 = vst [vmem:[%s5013_s15] sm:$0xff] %v2545_v43  ;;  %v2546_v30 = vpack.c.bf16 %v2207_v60, %v2205_v35 }
 0xcad   : > { %2223 = vst [vmem:[%s5013_s15 + $0x8] sm:$0xff] %v2546_v30 }
 0xcae   : > { %3792 = shalt.err (!%p3789_p9)
}
 0xcaf   : > { %s3793_s25 = scalar_lea.hbm %s6057_s6, 256  ;;  %s3797_s30 = scalar_lea.hbm %s6107_s2, 512 }
 0xcb0   : > { %p3794_p1 = scmp.ne.s32.totalorder %s6057_s6, %s3793_s25  ;;  %p3798_p11 = scmp.lt.u32.totalorder %s6057_s6, %s6107_s2 }
 0xcb1   : > { %p3799_p2 = scmp.lt.u32.totalorder %s3797_s30, %s3793_s25  ;;  %p3801_p6 = scmp.lt.u32.totalorder %s3793_s25, %s6057_s6 }
 0xcb2   : > { %p3795_p0 = pnand %p3794_p1, %p4377_p12 }
 0xcb3   : > { %p3800_p4 = por %p3799_p2, %p3798_p11 }
 0xcb4   : > { %p3796_p5 = pneg %p3795_p0 }
 0xcb5   : > { %p3802_p8 = por %p3801_p6, %p3800_p4 }
 0xcb7   : > { %p3803_p10 = pnand %p3802_p8, %p3796_p5 }
 0xcb9   : > { %3806 = shalt.err (!%p3803_p10)
}
 0xcba   : > { %s4266_s17 = smov 128   ;;  %s4267_s4 = smov 8  }
 0xcbb   : > { %2991 = dma.vmem_to_hbm [thread:$0]  (%p4377_p12), %s6059_s22, 256, %s6057_s6, %s2225_s7, %s4266_s17, %s4266_s17, %s4267_s4  }
 0xcbc PF: > { %s2253_s5 = sand.u32 1, %s4041_s9   ;;  %p6543_p13 = scmp.ne.s32.totalorder %s6210_s16, 0 }
 0xcbd   : > { %p6544_p3 = scmp.ge.s32.totalorder %s4053_s12, 2  ;;  %s2254_s27 = scalar_lea.sflag [#allocation4], %s2253_s5 }
 0xcbf   : > { %p3002_p7 = pnand %p6544_p3, %p6543_p13 }
 0xcc1   : > { %4036 = dma.done.wait (!%p3002_p7), %s2254_s27, 256  }
 0xcc2   : > { %4038 = vsyncadd (!%p3002_p7), %s2254_s27, 4294967040  ;;  %p16_p9 = scmp.ge.s32.totalorder %s4339_s21, 4   ;;  %s6545_s9 = smov %s4045_s10 }
 0xcc3   : > { %s6546_s10 = smov %s4049_s11  ;;  %s6547_s11 = smov %s4373_s8 }
 0xcc4   : > { %s6548_s12 = smov %s4339_s21  ;;  %18 = sbr.rel (!%p16_p9) target bundleno = 6 (0x6), region = 95 }
 0xccb   :  { %2259 = vsyncpa [#allocation3], 1 }
 0xccc   :  { %2261 = vsyncpa [#allocation3 + $0x1], 1 }
 0xccd   :  { %2262 = vsyncpa [#allocation6], 1 }
 0xcce   :  { %2263 = vsyncpa [#allocation4], 1 }
 0xccf   :  { %2265 = vsyncpa [#allocation4 + $0x1], 1 }

</bundles_post_ra>
